<compile_context>
chip_gen: v6e
topology: v6e:2x2x1
jax: 0.10.0
libtpu: 0.0.40
codegen_flags: <defaults>
</compile_context>

<pallas_src>
import functools

import numpy as np
import jax
import jax.numpy as jnp
from jax.experimental import pallas as pl
from jax.experimental.pallas import tpu as pltpu


N_FEAT = 1000       # feature width the wrapped `net` returns
N_CLS = 10          # head classes
N_FEAT_PAD = 1024   # lane-dense feature width (zero-padded)
N_CLS_PAD = 128     # lane-dense head width (zero-padded, masked softmax)
NEG_INF = -1e30

_VMEM = pl.BlockSpec(memory_space=pltpu.MemorySpace.VMEM)


# ----------------------------------------------------------------------------
# Fused Pallas kernel: whole forward pass, VMEM-resident end to end.
# ----------------------------------------------------------------------------

def _fused_resnet_kernel(x_ref, wc1_ref, bc1_ref, wc2a_ref, bc2a_ref,
                         wc2b_ref, bc2b_ref, pool_ref, wf_ref, bf_ref,
                         wh_ref, bh_ref,
                         feat_ref, prob_ref,
                         canvas,
                         *, B, H, W, C):
    HB = H * B      # matmul rows: one per (height-row, batch) pair
    WC = W * C      # lane width: 16 * 8 = 128 at the toy size

    def conv3x3(w_ref, b_ref):
        # 3x3 / pad-1 conv as ONE matmul:
        #  - W taps + W zero-padding folded into the block-Toeplitz weight.
        #  - H taps = 3 overlapping row windows of the H-padded canvas,
        #    concatenated along lanes (128-aligned pieces).
        x0 = canvas[pl.ds(0 * B, HB), :]
        x1 = canvas[pl.ds(1 * B, HB), :]
        x2 = canvas[pl.ds(2 * B, HB), :]
        slab = jnp.concatenate([x0, x1, x2], axis=-1).astype(jnp.bfloat16)
        out = jnp.dot(slab, w_ref[...], preferred_element_type=jnp.float32)
        return out + b_ref[...]                       # bias added once per conv

    # Zero the canvas ONCE: the H-padding border rows stay zero forever and the
    # interior is fully rewritten before every conv (single reused canvas).
    canvas[...] = jnp.zeros_like(canvas)

    # --- backbone (self.net) ---
    canvas[pl.ds(B, HB), :] = x_ref[...]
    h1 = jnp.maximum(conv3x3(wc1_ref, bc1_ref), 0.0)              # (HB, WC)

    canvas[pl.ds(B, HB), :] = h1
    r = jnp.maximum(conv3x3(wc2a_ref, bc2a_ref), 0.0)

    canvas[pl.ds(B, HB), :] = r
    h2 = jnp.maximum(conv3x3(wc2b_ref, bc2b_ref) + h1, 0.0)       # residual + ReLU

    # Global average pool + fc_feat as two matmuls (no XLU reductions):
    #   pool (B, HB) sums rows per batch (scaled 1/(H*W));
    #   wf (WC, 1024) is fc_feat_w tiled over j, so the j-sum rides the MXU too.
    pooled = jnp.dot(pool_ref[...], h2.astype(jnp.bfloat16),
                     preferred_element_type=jnp.float32)          # (B, WC)
    feat = jnp.dot(pooled.astype(jnp.bfloat16), wf_ref[...],
                   preferred_element_type=jnp.float32) + bf_ref[...]
    feat_ref[...] = feat.astype(feat_ref.dtype)                   # (B, 1024)

    # --- head: ReLU -> Dropout(eval = identity) -> Linear(1000,10) -> Softmax ---
    # TODO(synk): training-mode stochastic dropout (pltpu.prng_random_bits) not implemented.
    xr = jnp.maximum(feat, 0.0)
    logits = jnp.dot(xr.astype(jnp.bfloat16), wh_ref[...],
                     preferred_element_type=jnp.float32) + bh_ref[...]
    # bh carries -1e30 in the 118 padded class columns -> exp() == 0 there, so
    # the softmax over the lane-dense (B, 128) buffer equals softmax over 10.
    m = jnp.max(logits, axis=1, keepdims=True)
    e = jnp.exp(logits - m)
    prob_ref[...] = (e / jnp.sum(e, axis=1, keepdims=True)).astype(prob_ref.dtype)


# ----------------------------------------------------------------------------
# Wrapper
# ----------------------------------------------------------------------------

def resnet_with_output_forward(packed, x_nchw):
    B, C_in, H, W = x_nchw.shape
    C = packed["bc1"].shape[1] // W          # padded channel width (8)
    HB, WC = H * B, W * C
    n_feat_pad = packed["wf"].shape[1]
    n_cls_pad = packed["wh"].shape[1]

    # NCHW -> dense (H*B, W*C) layout: row = i*B + b, col = j*C + c
    xt = jnp.transpose(x_nchw.astype(jnp.float32), (2, 0, 3, 1))  # (H, B, W, C_in)
    xt = jnp.pad(xt, ((0, 0), (0, 0), (0, 0), (0, C - C_in)))     # pad channels 4 -> 8
    x_dense = xt.reshape(HB, WC)

    kernel = functools.partial(_fused_resnet_kernel, B=B, H=H, W=W, C=C)

    feat_pad, prob_pad = pl.pallas_call(
        kernel,
        out_shape=(jax.ShapeDtypeStruct((B, n_feat_pad), jnp.float32),
                   jax.ShapeDtypeStruct((B, n_cls_pad), jnp.float32)),
        in_specs=[_VMEM] * 12,
        out_specs=(_VMEM, _VMEM),
        scratch_shapes=[pltpu.VMEM(((H + 2) * B, WC), jnp.float32)],  # single reused canvas
    )(x_dense,
      packed["wc1"], packed["bc1"],
      packed["wc2a"], packed["bc2a"],
      packed["wc2b"], packed["bc2b"],
      packed["pool"], packed["wf"], packed["bf"],
      packed["wh"], packed["bh"])

    x_10 = prob_pad[:, :N_CLS]
    x_1000 = feat_pad[:, :N_FEAT]
    return x_10, x_1000


# ----------------------------------------------------------------------------
# Parameters: natural layout (for the reference) + kernel packing
# ----------------------------------------------------------------------------

def init_params(key, c_in=4, c_mid=8):
    ks = jax.random.split(key, 10)
    return {
        "conv1_w": jax.random.normal(ks[0], (3, 3, c_in, c_mid), jnp.float32) * 0.1,
        "conv1_b": jax.random.normal(ks[1], (c_mid,), jnp.float32) * 0.05,
        "conv2a_w": jax.random.normal(ks[2], (3, 3, c_mid, c_mid), jnp.float32) * 0.1,
        "conv2a_b": jax.random.normal(ks[3], (c_mid,), jnp.float32) * 0.05,
        "conv2b_w": jax.random.normal(ks[4], (3, 3, c_mid, c_mid), jnp.float32) * 0.1,
        "conv2b_b": jax.random.normal(ks[5], (c_mid,), jnp.float32) * 0.05,
        "fc_feat_w": jax.random.normal(ks[6], (c_mid, N_FEAT), jnp.float32) * 0.1,
        "fc_feat_b": jax.random.normal(ks[7], (N_FEAT,), jnp.float32) * 0.01,
        "fc1_w": jax.random.normal(ks[8], (N_FEAT, N_CLS), jnp.float32) * 0.03,
        "fc1_b": jax.random.normal(ks[9], (N_CLS,), jnp.float32) * 0.01,
    }


def _toeplitz_conv_weight(w, W, c_in_pad):
    # w: (3, 3, c_in, c_out) indexed (di, dj, ci, co).
    # Returns (3*W*c_in_pad, W*c_out): rows are [di=0 | di=1 | di=2] blocks of
    # the block-tridiagonal (W*c_in_pad, W*c_out) Toeplitz matrix M_di with
    #   M_di[ji*c_in_pad + c, jo*c_out + o] = w[di, ji-jo+1, c, o]  (W-pad clipped).
    w = np.asarray(jax.device_get(w), np.float32)
    _, _, c_in, c_out = w.shape
    m = np.zeros((3, W * c_in_pad, W * c_out), np.float32)
    for di in range(3):
        for dj in range(3):
            for jo in range(W):
                ji = jo + dj - 1
                if 0 <= ji < W:
                    m[di, ji * c_in_pad:ji * c_in_pad + c_in,
                         jo * c_out:(jo + 1) * c_out] = w[di, dj]
    return m.reshape(3 * W * c_in_pad, W * c_out)


def pack_params(p, *, B, H, W, c_mid=8):
    C = c_mid

    def tile_bias(b):
        return np.tile(np.asarray(jax.device_get(b), np.float32), W).reshape(1, W * C)

    # Pooling/selection matrix: pool[b, i*B + b'] = (b == b') / (H*W)
    r = np.arange(H * B)
    pool = (r[None, :] % B == np.arange(B)[:, None]).astype(np.float32) / float(H * W)

    # fc_feat: pad 1000 -> 1024, tile over j so row j*C + c holds fc_feat_w[c, :]
    wf_nat = np.asarray(jax.device_get(p["fc_feat_w"]), np.float32)
    wf_pad = np.zeros((C, N_FEAT_PAD), np.float32)
    wf_pad[:, :N_FEAT] = wf_nat
    wf = np.tile(wf_pad, (W, 1))                                   # (W*C, 1024)
    bf = np.zeros((1, N_FEAT_PAD), np.float32)
    bf[0, :N_FEAT] = np.asarray(jax.device_get(p["fc_feat_b"]), np.float32)

    # fc1: pad 10 -> 128 classes; padded columns get -1e30 bias (masked softmax)
    wh = np.zeros((N_FEAT_PAD, N_CLS_PAD), np.float32)
    wh[:N_FEAT, :N_CLS] = np.asarray(jax.device_get(p["fc1_w"]), np.float32)
    bh = np.full((1, N_CLS_PAD), NEG_INF, np.float32)
    bh[0, :N_CLS] = np.asarray(jax.device_get(p["fc1_b"]), np.float32)

    return {
        "wc1": jnp.asarray(_toeplitz_conv_weight(p["conv1_w"], W, C), jnp.bfloat16),
        "bc1": jnp.asarray(tile_bias(p["conv1_b"])),
        "wc2a": jnp.asarray(_toeplitz_conv_weight(p["conv2a_w"], W, C), jnp.bfloat16),
        "bc2a": jnp.asarray(tile_bias(p["conv2a_b"])),
        "wc2b": jnp.asarray(_toeplitz_conv_weight(p["conv2b_w"], W, C), jnp.bfloat16),
        "bc2b": jnp.asarray(tile_bias(p["conv2b_b"])),
        "pool": jnp.asarray(pool, jnp.bfloat16),
        "wf": jnp.asarray(wf, jnp.bfloat16),
        "bf": jnp.asarray(bf),
        "wh": jnp.asarray(wh, jnp.bfloat16),
        "bh": jnp.asarray(bh),
    }


# ----------------------------------------------------------------------------
# Pure-JAX reference (same bf16-rounded weights, f32 math) for validation
# ----------------------------------------------------------------------------

def _reference_forward(p, x_nchw):
    def rw(w):  # match the kernel's bf16 weight rounding
        return w.astype(jnp.bfloat16).astype(jnp.float32)

    x = jnp.transpose(x_nchw, (0, 2, 3, 1)).astype(jnp.float32)   # NHWC
    B, H, W, _ = x.shape

    def conv(h, w, b):
        hp = jnp.pad(h, ((0, 0), (1, 1), (1, 1), (0, 0)))
        out = 0.0
        for di in range(3):
            for dj in range(3):
                out = out + jnp.einsum("bhwc,co->bhwo",
                                       hp[:, di:di + H, dj:dj + W, :], rw(w[di, dj]))
        return out + b.reshape(1, 1, 1, -1)

    h1 = jax.nn.relu(conv(x, p["conv1_w"], p["conv1_b"]))
    rr = jax.nn.relu(conv(h1, p["conv2a_w"], p["conv2a_b"]))
    h2 = jax.nn.relu(conv(rr, p["conv2b_w"], p["conv2b_b"]) + h1)
    pooled = jnp.mean(h2, axis=(1, 2))
    feat = pooled @ rw(p["fc_feat_w"]) + p["fc_feat_b"]
    logits = jax.nn.relu(feat) @ rw(p["fc1_w"]) + p["fc1_b"]       # dropout = identity (eval)
    return jax.nn.softmax(logits, axis=1), feat


# ----------------------------------------------------------------------------
# Main
# ----------------------------------------------------------------------------

if __name__ == "__main__":
    key = jax.random.PRNGKey(0)
    k_param, k_input = jax.random.split(key)

    B, C_in, H, W = 2, 4, 16, 16
    params = init_params(k_param, c_in=C_in, c_mid=8)
    packed = pack_params(params, B=B, H=H, W=W, c_mid=8)
    x = jax.random.normal(k_input, (B, C_in, H, W), jnp.float32)   # NCHW, like PyTorch

    fwd = jax.jit(resnet_with_output_forward)
    x_10, x_1000 = fwd(packed, x)
    jax.block_until_ready((x_10, x_1000))

    assert x_10.shape == (B, N_CLS)
    assert x_1000.shape == (B, N_FEAT)
    assert bool(jnp.all(jnp.isfinite(x_10))) and bool(jnp.all(jnp.isfinite(x_1000)))
    # exact divide in the softmax -> rows sum to 1 tightly
    assert bool(jnp.all(jnp.abs(jnp.sum(x_10, axis=1) - 1.0) < 1e-3))

    # cross-check against the pure-JAX reference (differences come only from
    # bf16 activation casts feeding the MXU inside the kernel)
    r_10, r_1000 = _reference_forward(params, x)
    assert bool(jnp.allclose(x_10, r_10, rtol=5e-2, atol=5e-2))
    assert bool(jnp.allclose(x_1000, r_1000, rtol=5e-2, atol=5e-2))

    print("KERNEL_OK")
</pallas_src>

<mosaic_0001>
module attributes {stable_mosaic.version = 11 : i64} {
  func.func @_fused_resnet_kernel(%arg0: memref<32x128xf32, #tpu.memory_space<vmem>>, %arg1: memref<384x128xbf16, #tpu.memory_space<vmem>>, %arg2: memref<1x128xf32, #tpu.memory_space<vmem>>, %arg3: memref<384x128xbf16, #tpu.memory_space<vmem>>, %arg4: memref<1x128xf32, #tpu.memory_space<vmem>>, %arg5: memref<384x128xbf16, #tpu.memory_space<vmem>>, %arg6: memref<1x128xf32, #tpu.memory_space<vmem>>, %arg7: memref<2x32xbf16, #tpu.memory_space<vmem>>, %arg8: memref<128x1024xbf16, #tpu.memory_space<vmem>>, %arg9: memref<1x1024xf32, #tpu.memory_space<vmem>>, %arg10: memref<1024x128xbf16, #tpu.memory_space<vmem>>, %arg11: memref<1x128xf32, #tpu.memory_space<vmem>>, %arg12: memref<2x1024xf32, #tpu.memory_space<vmem>>, %arg13: memref<2x128xf32, #tpu.memory_space<vmem>>, %arg14: memref<36x128xf32, #tpu.memory_space<vmem>>) attributes {dimension_semantics = [], scalar_prefetch = 0 : i64, scratch_operands = 1 : i64, tpu.core_type = #tpu.core_type<tc>} {
    %cst = arith.constant 0.000000e+00 : f32
    %0 = vector.broadcast %cst : f32 to vector<36x128xf32>
    %c0 = arith.constant 0 : index
    %c0_0 = arith.constant 0 : index
    %1 = vector.load %arg14[%c0, %c0_0] : memref<36x128xf32, #tpu.memory_space<vmem>>, vector<36x128xf32>
    tpu.vector_store %arg14[%c0, %c0_0], %0 {strides = array<i32>} : memref<36x128xf32, #tpu.memory_space<vmem>>, vector<36x128xf32>,
    %c0_1 = arith.constant 0 : index
    %c0_2 = arith.constant 0 : index
    %2 = vector.load %arg0[%c0_1, %c0_2] : memref<32x128xf32, #tpu.memory_space<vmem>>, vector<32x128xf32>
    %c2 = arith.constant 2 : index
    %c0_3 = arith.constant 0 : index
    %3 = vector.load %arg14[%c2, %c0_3] : memref<36x128xf32, #tpu.memory_space<vmem>>, vector<32x128xf32>
    tpu.vector_store %arg14[%c2, %c0_3], %2 {strides = array<i32>} : memref<36x128xf32, #tpu.memory_space<vmem>>, vector<32x128xf32>,
    %c0_4 = arith.constant 0 : index
    %c0_5 = arith.constant 0 : index
    %4 = vector.load %arg14[%c0_4, %c0_5] : memref<36x128xf32, #tpu.memory_space<vmem>>, vector<32x128xf32>
    %c2_6 = arith.constant 2 : index
    %c0_7 = arith.constant 0 : index
    %5 = vector.load %arg14[%c2_6, %c0_7] : memref<36x128xf32, #tpu.memory_space<vmem>>, vector<32x128xf32>
    %c4 = arith.constant 4 : index
    %c0_8 = arith.constant 0 : index
    %6 = vector.load %arg14[%c4, %c0_8] : memref<36x128xf32, #tpu.memory_space<vmem>>, vector<32x128xf32>
    %7 = tpu.concatenate %4, %5, %6 in 1 : vector<32x128xf32>, vector<32x128xf32>, vector<32x128xf32> -> vector<32x384xf32>
    %8 = arith.truncf %7 : vector<32x384xf32> to vector<32x384xbf16>
    %c0_9 = arith.constant 0 : index
    %c0_10 = arith.constant 0 : index
    %9 = vector.load %arg1[%c0_9, %c0_10] : memref<384x128xbf16, #tpu.memory_space<vmem>>, vector<384x128xbf16>
    %cst_11 = arith.constant dense<0.000000e+00> : vector<32x128xf32>
    %10 = tpu.matmul %8, %9, %cst_11 {dimension_numbers = #tpu.dot_dimension_numbers<[1], [0], [0], [1], [0, 0, 1, 1], [], []>} : vector<32x384xbf16>, vector<384x128xbf16>, vector<32x128xf32> -> vector<32x128xf32>
    %c0_12 = arith.constant 0 : index
    %c0_13 = arith.constant 0 : index
    %11 = vector.load %arg2[%c0_12, %c0_13] : memref<1x128xf32, #tpu.memory_space<vmem>>, vector<1x128xf32>
    %12 = vector.broadcast %11 : vector<1x128xf32> to vector<32x128xf32>
    %13 = arith.addf %10, %12 : vector<32x128xf32>
    %cst_14 = arith.constant 0.000000e+00 : f32
    %14 = vector.broadcast %cst_14 : f32 to vector<32x128xf32>
    %15 = arith.maximumf %13, %14 : vector<32x128xf32>
    %c2_15 = arith.constant 2 : index
    %c0_16 = arith.constant 0 : index
    %16 = vector.load %arg14[%c2_15, %c0_16] : memref<36x128xf32, #tpu.memory_space<vmem>>, vector<32x128xf32>
    tpu.vector_store %arg14[%c2_15, %c0_16], %15 {strides = array<i32>} : memref<36x128xf32, #tpu.memory_space<vmem>>, vector<32x128xf32>,
    %c0_17 = arith.constant 0 : index
    %c0_18 = arith.constant 0 : index
    %17 = vector.load %arg14[%c0_17, %c0_18] : memref<36x128xf32, #tpu.memory_space<vmem>>, vector<32x128xf32>
    %c2_19 = arith.constant 2 : index
    %c0_20 = arith.constant 0 : index
    %18 = vector.load %arg14[%c2_19, %c0_20] : memref<36x128xf32, #tpu.memory_space<vmem>>, vector<32x128xf32>
    %c4_21 = arith.constant 4 : index
    %c0_22 = arith.constant 0 : index
    %19 = vector.load %arg14[%c4_21, %c0_22] : memref<36x128xf32, #tpu.memory_space<vmem>>, vector<32x128xf32>
    %20 = tpu.concatenate %17, %18, %19 in 1 : vector<32x128xf32>, vector<32x128xf32>, vector<32x128xf32> -> vector<32x384xf32>
    %21 = arith.truncf %20 : vector<32x384xf32> to vector<32x384xbf16>
    %c0_23 = arith.constant 0 : index
    %c0_24 = arith.constant 0 : index
    %22 = vector.load %arg3[%c0_23, %c0_24] : memref<384x128xbf16, #tpu.memory_space<vmem>>, vector<384x128xbf16>
    %cst_25 = arith.constant dense<0.000000e+00> : vector<32x128xf32>
    %23 = tpu.matmul %21, %22, %cst_25 {dimension_numbers = #tpu.dot_dimension_numbers<[1], [0], [0], [1], [0, 0, 1, 1], [], []>} : vector<32x384xbf16>, vector<384x128xbf16>, vector<32x128xf32> -> vector<32x128xf32>
    %c0_26 = arith.constant 0 : index
    %c0_27 = arith.constant 0 : index
    %24 = vector.load %arg4[%c0_26, %c0_27] : memref<1x128xf32, #tpu.memory_space<vmem>>, vector<1x128xf32>
    %25 = vector.broadcast %24 : vector<1x128xf32> to vector<32x128xf32>
    %26 = arith.addf %23, %25 : vector<32x128xf32>
    %cst_28 = arith.constant 0.000000e+00 : f32
    %27 = vector.broadcast %cst_28 : f32 to vector<32x128xf32>
    %28 = arith.maximumf %26, %27 : vector<32x128xf32>
    %c2_29 = arith.constant 2 : index
    %c0_30 = arith.constant 0 : index
    %29 = vector.load %arg14[%c2_29, %c0_30] : memref<36x128xf32, #tpu.memory_space<vmem>>, vector<32x128xf32>
    tpu.vector_store %arg14[%c2_29, %c0_30], %28 {strides = array<i32>} : memref<36x128xf32, #tpu.memory_space<vmem>>, vector<32x128xf32>,
    %c0_31 = arith.constant 0 : index
    %c0_32 = arith.constant 0 : index
    %30 = vector.load %arg14[%c0_31, %c0_32] : memref<36x128xf32, #tpu.memory_space<vmem>>, vector<32x128xf32>
    %c2_33 = arith.constant 2 : index
    %c0_34 = arith.constant 0 : index
    %31 = vector.load %arg14[%c2_33, %c0_34] : memref<36x128xf32, #tpu.memory_space<vmem>>, vector<32x128xf32>
    %c4_35 = arith.constant 4 : index
    %c0_36 = arith.constant 0 : index
    %32 = vector.load %arg14[%c4_35, %c0_36] : memref<36x128xf32, #tpu.memory_space<vmem>>, vector<32x128xf32>
    %33 = tpu.concatenate %30, %31, %32 in 1 : vector<32x128xf32>, vector<32x128xf32>, vector<32x128xf32> -> vector<32x384xf32>
    %34 = arith.truncf %33 : vector<32x384xf32> to vector<32x384xbf16>
    %c0_37 = arith.constant 0 : index
    %c0_38 = arith.constant 0 : index
    %35 = vector.load %arg5[%c0_37, %c0_38] : memref<384x128xbf16, #tpu.memory_space<vmem>>, vector<384x128xbf16>
    %cst_39 = arith.constant dense<0.000000e+00> : vector<32x128xf32>
    %36 = tpu.matmul %34, %35, %cst_39 {dimension_numbers = #tpu.dot_dimension_numbers<[1], [0], [0], [1], [0, 0, 1, 1], [], []>} : vector<32x384xbf16>, vector<384x128xbf16>, vector<32x128xf32> -> vector<32x128xf32>
    %c0_40 = arith.constant 0 : index
    %c0_41 = arith.constant 0 : index
    %37 = vector.load %arg6[%c0_40, %c0_41] : memref<1x128xf32, #tpu.memory_space<vmem>>, vector<1x128xf32>
    %38 = vector.broadcast %37 : vector<1x128xf32> to vector<32x128xf32>
    %39 = arith.addf %36, %38 : vector<32x128xf32>
    %40 = arith.addf %39, %15 : vector<32x128xf32>
    %cst_42 = arith.constant 0.000000e+00 : f32
    %41 = vector.broadcast %cst_42 : f32 to vector<32x128xf32>
    %42 = arith.maximumf %40, %41 : vector<32x128xf32>
    %c0_43 = arith.constant 0 : index
    %c0_44 = arith.constant 0 : index
    %43 = vector.load %arg7[%c0_43, %c0_44] : memref<2x32xbf16, #tpu.memory_space<vmem>>, vector<2x32xbf16>
    %44 = arith.truncf %42 : vector<32x128xf32> to vector<32x128xbf16>
    %cst_45 = arith.constant dense<0.000000e+00> : vector<2x128xf32>
    %45 = tpu.matmul %43, %44, %cst_45 {dimension_numbers = #tpu.dot_dimension_numbers<[1], [0], [0], [1], [0, 0, 1, 1], [], []>} : vector<2x32xbf16>, vector<32x128xbf16>, vector<2x128xf32> -> vector<2x128xf32>
    %46 = arith.truncf %45 : vector<2x128xf32> to vector<2x128xbf16>
    %c0_46 = arith.constant 0 : index
    %c0_47 = arith.constant 0 : index
    %47 = vector.load %arg8[%c0_46, %c0_47] : memref<128x1024xbf16, #tpu.memory_space<vmem>>, vector<128x1024xbf16>
    %cst_48 = arith.constant dense<0.000000e+00> : vector<2x1024xf32>
    %48 = tpu.matmul %46, %47, %cst_48 {dimension_numbers = #tpu.dot_dimension_numbers<[1], [0], [0], [1], [0, 0, 1, 1], [], []>} : vector<2x128xbf16>, vector<128x1024xbf16>, vector<2x1024xf32> -> vector<2x1024xf32>
    %c0_49 = arith.constant 0 : index
    %c0_50 = arith.constant 0 : index
    %49 = vector.load %arg9[%c0_49, %c0_50] : memref<1x1024xf32, #tpu.memory_space<vmem>>, vector<1x1024xf32>
    %50 = vector.broadcast %49 : vector<1x1024xf32> to vector<2x1024xf32>
    %51 = arith.addf %48, %50 : vector<2x1024xf32>
    %c0_51 = arith.constant 0 : index
    %c0_52 = arith.constant 0 : index
    %52 = vector.load %arg12[%c0_51, %c0_52] : memref<2x1024xf32, #tpu.memory_space<vmem>>, vector<2x1024xf32>
    tpu.vector_store %arg12[%c0_51, %c0_52], %51 {strides = array<i32>} : memref<2x1024xf32, #tpu.memory_space<vmem>>, vector<2x1024xf32>,
    %cst_53 = arith.constant 0.000000e+00 : f32
    %53 = vector.broadcast %cst_53 : f32 to vector<2x1024xf32>
    %54 = arith.maximumf %51, %53 : vector<2x1024xf32>
    %55 = arith.truncf %54 : vector<2x1024xf32> to vector<2x1024xbf16>
    %c0_54 = arith.constant 0 : index
    %c0_55 = arith.constant 0 : index
    %56 = vector.load %arg10[%c0_54, %c0_55] : memref<1024x128xbf16, #tpu.memory_space<vmem>>, vector<1024x128xbf16>
    %cst_56 = arith.constant dense<0.000000e+00> : vector<2x128xf32>
    %57 = tpu.matmul %55, %56, %cst_56 {dimension_numbers = #tpu.dot_dimension_numbers<[1], [0], [0], [1], [0, 0, 1, 1], [], []>} : vector<2x1024xbf16>, vector<1024x128xbf16>, vector<2x128xf32> -> vector<2x128xf32>
    %c0_57 = arith.constant 0 : index
    %c0_58 = arith.constant 0 : index
    %58 = vector.load %arg11[%c0_57, %c0_58] : memref<1x128xf32, #tpu.memory_space<vmem>>, vector<1x128xf32>
    %59 = vector.broadcast %58 : vector<1x128xf32> to vector<2x128xf32>
    %60 = arith.addf %57, %59 : vector<2x128xf32>
    %cst_59 = arith.constant dense<0xFF800000> : vector<2xf32>
    %61 = vector.multi_reduction <maximumf>, %60, %cst_59 [1] : vector<2x128xf32> to vector<2xf32>
    %62 = vector.shape_cast %61 : vector<2xf32> to vector<2x1xf32>
    %63 = vector.broadcast %62 : vector<2x1xf32> to vector<2x128xf32>
    %64 = arith.subf %60, %63 : vector<2x128xf32>
    %65 = math.exp %64 : vector<2x128xf32>
    %cst_60 = arith.constant dense<0.000000e+00> : vector<2xf32>
    %66 = vector.multi_reduction <add>, %65, %cst_60 [1] : vector<2x128xf32> to vector<2xf32>
    %67 = vector.shape_cast %66 : vector<2xf32> to vector<2x1xf32>
    %68 = vector.broadcast %67 : vector<2x1xf32> to vector<2x128xf32>
    %69 = arith.divf %65, %68 : vector<2x128xf32>
    %c0_61 = arith.constant 0 : index
    %c0_62 = arith.constant 0 : index
    %70 = vector.load %arg13[%c0_61, %c0_62] : memref<2x128xf32, #tpu.memory_space<vmem>>, vector<2x128xf32>
    tpu.vector_store %arg13[%c0_61, %c0_62], %69 {strides = array<i32>} : memref<2x128xf32, #tpu.memory_space<vmem>>, vector<2x128xf32>,
    return
  }
}

</mosaic_0001>

<bundles_post_ra>
// kernel: resnet_with_output_forward.1
= control target key start
LH: loop header
LB: loop body
LE: loop exit
PB: predicated region body
PF: predicated region fallthrough
CT: control target
= control target key end

     0   :  { %19 = vsyncpa [#allocation4], 0  ;;  %v3116_v2 = vmov 0.0   ;;  %s3889_s0 = inlined_call_operand.vmem [shape: f32[32,128], index: 0, kind: input, shape index: {}]   ;;  %s3890_s1 = inlined_call_operand.vmem [shape: bf16[384,128], index: 1, kind: input, shape index: {}]   ;;  %s3891_s2 = inlined_call_operand.vmem [shape: f32[1,128], index: 2, kind: input, shape index: {}]   ;;  %s3892_s3 = inlined_call_operand.vmem [shape: bf16[384,128], index: 3, kind: input, shape index: {}]   ;;  %s3893_s4 = inlined_call_operand.vmem [shape: f32[1,128], index: 4, kind: input, shape index: {}]   ;;  %s3894_s5 = inlined_call_operand.vmem [shape: bf16[384,128], index: 5, kind: input, shape index: {}]   ;;  %s3895_s6 = inlined_call_operand.vmem [shape: f32[1,128], index: 6, kind: input, shape index: {}]   ;;  %s3896_s7 = inlined_call_operand.vmem [shape: bf16[2,32], index: 7, kind: input, shape index: {}]   ;;  %s3897_s8 = inlined_call_operand.vmem [shape: bf16[128,1024], index: 8, kind: input, shape index: {}]   ;;  %s3898_s9 = inlined_call_operand.vmem [shape: f32[1,1024], index: 9, kind: input, shape index: {}]   ;;  %s3899_s10 = inlined_call_operand.vmem [shape: bf16[1024,128], index: 10, kind: input, shape index: {}]   ;;  %s3900_s11 = inlined_call_operand.vmem [shape: f32[1,128], index: 11, kind: input, shape index: {}]   ;;  %s3901_s12 = inlined_call_operand.hbm [shape: f32[2,1024], index: 12, kind: output, shape index: {0}]   ;;  %s3902_s13 = inlined_call_operand.hbm [shape: f32[2,128], index: 13, kind: output, shape index: {1}]  }
   0x1   :  { %v2932_v0 = vld [vmem:[%s3890_s1 + $0x78] sm:$0xff]   ;;  %46 = vst [vmem:[#allocation2] sm:$0xff] %v3116_v2  ;;  %47 = vst [vmem:[#allocation2 + $0x8] sm:$0xff] %v3116_v2  ;;  %v2935_v4 = vld [vmem:[%s3890_s1 + $0x70] sm:$0xff]  }
   0x2   :  { %v2933_v1 = vld [vmem:[%s3890_s1 + $0x38] sm:$0xff]   ;;  %48 = vst [vmem:[#allocation2 + $0x10] sm:$0xff] %v3116_v2  ;;  %49 = vst [vmem:[#allocation2 + $0x18] sm:$0xff] %v3116_v2  ;;  %2653 = vmatprep.subr.bf16.mxu0 %v2932_v0  ;;  %v2936_v5 = vld [vmem:[%s3890_s1 + $0x30] sm:$0xff]  }
   0x3   :  { %50 = vst [vmem:[#allocation2 + $0x20] sm:$0xf] %v3116_v2  ;;  %v2934_v3 = vld [vmem:[%s3890_s1 + $0xb8] sm:$0xff]   ;;  %2654 = vmatpush3.bf16.msra.mxu0 %v2933_v1  ;;  %v2937_v6 = vld [vmem:[%s3890_s1 + $0xb0] sm:$0xff]   ;;  %v2938_v7 = vld [vmem:[%s3890_s1 + $0x68] sm:$0xff]  }
   0x4   :  { %2858 = vmatprep.subr.bf16.mxu1 %v2934_v3  ;;  %2655 = vmatprep.subr.bf16.mxu0 %v2935_v4  ;;  %v2939_v8 = vld [vmem:[%s3890_s1 + $0x28] sm:$0xff]   ;;  %v2941_v10 = vld [vmem:[%s3890_s1 + $0x60] sm:$0xff]   ;;  %v2944_v13 = vld [vmem:[%s3890_s1 + $0x58] sm:$0xff]  }
   0x5   :  { %2859 = vmatpush3.bf16.msra.mxu1 %v2934_v3  ;;  %v2940_v9 = vld [vmem:[%s3890_s1 + $0xa8] sm:$0xff]   ;;  %v2942_v11 = vld [vmem:[%s3890_s1 + $0x20] sm:$0xff]   ;;  %v2946_v14 = vld [vmem:[%s3890_s1 + $0x98] sm:$0xff]  }
   0x6   :  { %2860 = vmatprep.subr.bf16.mxu1 %v2937_v6  ;;  %v2943_v12 = vld [vmem:[%s3890_s1 + $0xa0] sm:$0xff]   ;;  %v2945_v15 = vld [vmem:[%s3890_s1 + $0x18] sm:$0xff]   ;;  %v2947_v16 = vld [vmem:[%s3890_s1 + $0x50] sm:$0xff]  }
   0x7   :  { %2656 = vmatpush3.bf16.msra.mxu0 %v2936_v5  ;;  %v2949_v17 = vld [vmem:[%s3890_s1 + $0x90] sm:$0xff]   ;;  %v2950_v19 = vld [vmem:[%s3890_s1 + $0x48] sm:$0xff]   ;;  %v2953_v22 = vld [vmem:[%s3890_s1 + $0x40] sm:$0xff]  }
   0x8   :  { %2657 = vmatprep.subr.bf16.mxu0 %v2938_v7  ;;  %v2948_v18 = vld [vmem:[%s3890_s1 + $0x10] sm:$0xff]   ;;  %v2951_v20 = vld [vmem:[%s3890_s1 + $0x8] sm:$0xff]   ;;  %v51_v23 = vld [vmem:[%s3889_s0] sm:$0xff] }
   0x9   :  { %2861 = vmatpush3.bf16.msra.mxu1 %v2937_v6  ;;  %v2952_v21 = vld [vmem:[%s3890_s1 + $0x88] sm:$0xff]   ;;  %v53_v25 = vld [vmem:[%s3889_s0 + $0x10] sm:$0xff]  ;;  %55 = vst [vmem:[#allocation2 + $0x2] sm:$0xff] %v51_v23  ;;  %v54_v27 = vld [vmem:[%s3889_s0 + $0x18] sm:$0xff] }
   0xa   :  { %2862 = vmatprep.subr.bf16.mxu1 %v2940_v9  ;;  %v52_v24 = vld [vmem:[%s3889_s0 + $0x8] sm:$0xff]  ;;  %57 = vst [vmem:[#allocation2 + $0x12] sm:$0xff] %v53_v25  ;;  %v2955_v28 = vld [vmem:[%s3890_s1 + $0x80] sm:$0xff]   ;;  %58 = vst [vmem:[#allocation2 + $0x1a] sm:$0xff] %v54_v27  ;;  %v75_v35 = vpack.c.bf16 %v54_v27, %v53_v25 }
   0xb   :  { %2658 = vmatpush3.bf16.msra.mxu0 %v2939_v8  ;;  %56 = vst [vmem:[#allocation2 + $0xa] sm:$0xff] %v52_v24  ;;  %v72_v26 = vpack.c.bf16 %v52_v24, %v51_v23  ;;  %v2954_v29 = vld [vmem:[%s3890_s1] sm:$0xff]   ;;  %v2956_v30 = vld [vmem:[%s3892_s3 + $0x78] sm:$0xff]   ;;  %v2958_v36 = vld [vmem:[%s3892_s3 + $0x70] sm:$0xff]  }
   0xc   :  { %2659 = vmatprep.subr.bf16.mxu0 %v2941_v10  ;;  %v2957_v31 = vld [vmem:[%s3892_s3 + $0x38] sm:$0xff]   ;;  %v2959_v45 = vld [vmem:[%s3892_s3 + $0x30] sm:$0xff]   ;;  %v2961_v48 = vld [vmem:[%s3892_s3 + $0x68] sm:$0xff]  }
   0xd   :  { %2863 = vmatpush3.bf16.msra.mxu1 %v2940_v9  ;;  %308 = vmatprep.mubr.bf16.mxu0 %v72_v26  ;;  %v2960_v47 = vld [vmem:[%s3892_s3 + $0xb8] sm:$0xff]   ;;  %v2962_v49 = vld [vmem:[%s3892_s3 + $0x28] sm:$0xff]   ;;  %v2963_v50 = vld [vmem:[%s3892_s3 + $0xb0] sm:$0xff]  }
   0xe   :  { %2864 = vmatprep.subr.bf16.mxu1 %v2943_v12  ;;  %v2964_v51 = vld [vmem:[%s3892_s3 + $0x60] sm:$0xff]   ;;  %v2966_v53 = vld [vmem:[%s3892_s3 + $0xa8] sm:$0xff]   ;;  %v2967_v54 = vld [vmem:[%s3892_s3 + $0x58] sm:$0xff]  }
   0xf   :  { %2660 = vmatpush3.bf16.msra.mxu0 %v2942_v11  ;;  %v2965_v52 = vld [vmem:[%s3892_s3 + $0x20] sm:$0xff]   ;;  %v2968_v55 = vld [vmem:[%s3892_s3 + $0x18] sm:$0xff]  }
  0x10   :  { %2661 = vmatprep.subr.bf16.mxu0 %v2944_v13  ;;  %v59_v32 = vld [vmem:[#allocation2] sm:$0xff] }
  0x11   :  { %2865 = vmatpush3.bf16.msra.mxu1 %v2943_v12  ;;  %v69_v39 = vld [vmem:[#allocation2 + $0x14] sm:$0xff]  ;;  %v70_v40 = vld [vmem:[#allocation2 + $0x1c] sm:$0xff] }
  0x12   :  { %2866 = vmatprep.subr.bf16.mxu1 %v2946_v14  ;;  %v60_v33 = vld [vmem:[#allocation2 + $0x8] sm:$0xff]  ;;  %v76_v42 = vpack.c.bf16 %v70_v40, %v69_v39  ;;  %v61_v43 = vld [vmem:[#allocation2 + $0x10] sm:$0xff]  ;;  %v62_v44 = vld [vmem:[#allocation2 + $0x18] sm:$0xff] }
  0x13   :  { %2662 = vmatpush3.bf16.msra.mxu0 %v2945_v15  ;;  %v67_v34 = vld [vmem:[#allocation2 + $0x4] sm:$0xff]  ;;  %v71_v37 = vpack.c.bf16 %v60_v33, %v59_v32  ;;  %v68_v38 = vld [vmem:[#allocation2 + $0xc] sm:$0xff]  ;;  %v74_v46 = vpack.c.bf16 %v62_v44, %v61_v43 }
  0x14   :  { %2663 = vmatprep.subr.bf16.mxu0 %v2947_v16  ;;  %v73_v41 = vpack.c.bf16 %v68_v38, %v67_v34 }
  0x15   :  { %2867 = vmatpush3.bf16.msra.mxu1 %v2946_v14 }
  0x16   :  { %2868 = vmatprep.subr.bf16.mxu1 %v2949_v17  ;;  %2874 = vmatprep.mubr.bf16.mxu1 %v73_v41 }
  0x17   :  { %2664 = vmatpush3.bf16.msra.mxu0 %v2948_v18 }
  0x18   :  { %2665 = vmatprep.subr.bf16.mxu0 %v2950_v19 }
  0x19   :  { %2869 = vmatpush3.bf16.msra.mxu1 %v2949_v17 }
  0x1a   :  { %2870 = vmatprep.subr.bf16.mxu1 %v2952_v21 }
  0x1b   :  { %2666 = vmatpush3.bf16.msra.mxu0 %v2951_v20 }
  0x1c   :  { %2667 = vmatprep.subr.bf16.mxu0 %v2953_v22 }
  0x1d   :  { %2871 = vmatpush3.bf16.msra.mxu1 %v2952_v21 }
  0x1e   :  { %2872 = vmatprep.subr.bf16.mxu1 %v2955_v28 }
  0x1f   :  { %2668 = vmatpush3.bf16.msra.mxu0 %v2954_v29 }
  0x20   :  { %2691 = vmatprep.subr.bf16.mxu0 %v2956_v30 }
  0x21   :  { %2873 = vmatpush3.bf16.msra.mxu1 %v2955_v28 }
  0x22   :  { %309 = vmatmul.mubr.bf16.vlgmr.msra.gmra.mxu0 %v71_v37  ;;  %2878 = vmatprep.subr.bf16.mxu1 %v2960_v47 }
  0x23   :  { %316 = vmatprep.mubr.bf16.mxu0 %v75_v35  ;;  %2692 = vmatpush3.bf16.msra.mxu0 %v2957_v31 }
  0x24   :  { %2875 = vmatmul.mubr.bf16.vlgmr.msra.gmra.mxu1 %v76_v42  ;;  %2693 = vmatprep.subr.bf16.mxu0 %v2958_v36 }
  0x25   :  { %2879 = vmatpush3.bf16.msra.mxu1 %v2960_v47 }
  0x26   :  { %2880 = vmatprep.subr.bf16.mxu1 %v2963_v50 }
  0x27   :  { %2694 = vmatpush3.bf16.msra.mxu0 %v2959_v45 }
  0x28   :  { %2695 = vmatprep.subr.bf16.mxu0 %v2961_v48 }
  0x29   :  { %2881 = vmatpush3.bf16.msra.mxu1 %v2963_v50 }
  0x2a   :  { %317 = vmatmul.mubr.bf16.gmra.mxu0 %v74_v46 }
  0x2b   :  { %2696 = vmatpush3.bf16.msra.mxu0 %v2962_v49 }
  0x2c   :  { %2697 = vmatprep.subr.bf16.mxu0 %v2964_v51 }
  0x2f   :  { %2698 = vmatpush3.bf16.msra.mxu0 %v2965_v52 }
  0x30   :  { %20 = vsyncpa [#allocation6], 0  ;;  %2882 = vmatprep.subr.bf16.mxu1 %v2966_v53  ;;  %2699 = vmatprep.subr.bf16.mxu0 %v2967_v54  ;;  %v2969_v56 = vld [vmem:[%s3892_s3 + $0xa0] sm:$0xff]   ;;  %v2970_v57 = vld [vmem:[%s3892_s3 + $0x50] sm:$0xff]   ;;  %vm3117_vm0 = vmmov 0   ;;  %vm1031_vm1 = vcmask 261120  }
  0x31   :  { %2883 = vmatpush3.bf16.msra.mxu1 %v2966_v53  ;;  %v2971_v58 = vld [vmem:[%s3892_s3 + $0x10] sm:$0xff]   ;;  %v2972_v59 = vld [vmem:[%s3892_s3 + $0x98] sm:$0xff]   ;;  %v2973_v60 = vld [vmem:[%s3892_s3 + $0x48] sm:$0xff]   ;;  %vm2407_vm2 = vcmask 1041408  }
  0x32   :  { %2884 = vmatprep.subr.bf16.mxu1 %v2969_v56  ;;  %v2974_v61 = vld [vmem:[%s3892_s3 + $0x8] sm:$0xff]   ;;  %v2975_v62 = vld [vmem:[%s3892_s3 + $0x90] sm:$0xff]   ;;  %v2976_v63 = vld [vmem:[%s3892_s3 + $0x40] sm:$0xff]  }
  0x33   :  { %2700 = vmatpush3.bf16.msra.mxu0 %v2968_v55  ;;  %v2977_v0 = vld [vmem:[%s3892_s3] sm:$0xff]   ;;  %v2978_v1 = vld [vmem:[%s3892_s3 + $0x88] sm:$0xff]   ;;  %v2980_v4 = vld [vmem:[%s3894_s5 + $0x78] sm:$0xff]  }
  0x34   :  { %2701 = vmatprep.subr.bf16.mxu0 %v2970_v57  ;;  %v2979_v3 = vld [vmem:[%s3892_s3 + $0x80] sm:$0xff]   ;;  %v2981_v37 = vld [vmem:[%s3894_s5 + $0x38] sm:$0xff]   ;;  %v2982_v49 = vld [vmem:[%s3894_s5 + $0x70] sm:$0xff]  }
  0x35   :  { %2885 = vmatpush3.bf16.msra.mxu1 %v2969_v56  ;;  %v2448_v8 = vld [vmem:[%s3891_s2] ss:$0 sm:$0xff]  ;;  %v2983_v50 = vld [vmem:[%s3894_s5 + $0xb8] sm:$0xff]   ;;  %v2984_v51 = vld [vmem:[%s3894_s5 + $0x30] sm:$0xff]  }
  0x36   :  { %2886 = vmatprep.subr.bf16.mxu1 %v2972_v59  ;;  %v2985_v52 = vld [vmem:[%s3894_s5 + $0x68] sm:$0xff]   ;;  %v2986_v53 = vld [vmem:[%s3894_s5 + $0xb0] sm:$0xff]   ;;  %v2988_v55 = vld [vmem:[%s3894_s5 + $0x60] sm:$0xff]  }
  0x37   :  { %2702 = vmatpush3.bf16.msra.mxu0 %v2971_v58  ;;  %v2987_v54 = vld [vmem:[%s3894_s5 + $0x28] sm:$0xff]   ;;  %v2990_v57 = vld [vmem:[%s3894_s5 + $0x20] sm:$0xff]   ;;  %v2991_v58 = vld [vmem:[%s3894_s5 + $0x58] sm:$0xff]  }
  0x38   :  { %2703 = vmatprep.subr.bf16.mxu0 %v2973_v60  ;;  %v2989_v56 = vld [vmem:[%s3894_s5 + $0xa8] sm:$0xff]   ;;  %v2993_v60 = vld [vmem:[%s3894_s5 + $0x18] sm:$0xff]  }
  0x39   :  { %2887 = vmatpush3.bf16.msra.mxu1 %v2972_v59  ;;  %v2992_v59 = vld [vmem:[%s3894_s5 + $0xa0] sm:$0xff]  }
  0x3a   :  { %2888 = vmatprep.subr.bf16.mxu1 %v2975_v62 }
  0x3b   :  { %2704 = vmatpush3.bf16.msra.mxu0 %v2974_v61  ;;  %v2994_v61 = vld [vmem:[%s3894_s5 + $0x50] sm:$0xff]  }
  0x3c   :  { %2705 = vmatprep.subr.bf16.mxu0 %v2976_v63  ;;  %v2996_v63 = vld [vmem:[%s3894_s5 + $0x10] sm:$0xff]  }
  0x3d   :  { %2889 = vmatpush3.bf16.msra.mxu1 %v2975_v62  ;;  %v2995_v62 = vld [vmem:[%s3894_s5 + $0x98] sm:$0xff]  }
  0x3e   :  { %2890 = vmatprep.subr.bf16.mxu1 %v2978_v1 }
  0x3f   :  { %2706 = vmatpush3.bf16.msra.mxu0 %v2977_v0  ;;  %v2997_v0 = vld [vmem:[%s3894_s5 + $0x48] sm:$0xff]  }
  0x40   :  { %2729 = vmatprep.subr.bf16.mxu0 %v2980_v4  ;;  %v3000_v4 = vld [vmem:[%s3894_s5 + $0x40] sm:$0xff]  }
  0x41   :  { %2891 = vmatpush3.bf16.msra.mxu1 %v2978_v1  ;;  %v2998_v1 = vld [vmem:[%s3894_s5 + $0x90] sm:$0xff]  }
  0x42   :  { %2892 = vmatprep.subr.bf16.mxu1 %v2979_v3 }
  0x45   :  { %2893 = vmatpush3.bf16.msra.mxu1 %v2979_v3  ;;  %v2999_v3 = vld [vmem:[%s3894_s5 + $0x8] sm:$0xff]  }
  0x46   :  { %2898 = vmatprep.subr.bf16.mxu1 %v2983_v50 }
  0xe2   :  { %v2669_v5 = vpop.f32.mrf.mxu0 }
  0xe4   :  { %v2876_v6 = vpop.f32.mrf.mxu1  ;;  %v2670_v7 = vpop.f32.mrf.mxu0 }
  0xe5   :  { %v2671_v9 = vadd.f32 %v2670_v7, %v2669_v5  ;;  %v3001_v5 = vld [vmem:[%s3894_s5 + $0x88] sm:$0xff]   ;;  %v3003_v7 = vld [vmem:[%s3894_s5 + $0x80] sm:$0xff]  }
  0xe6   :  { %v359_v10 = vpop.f32.mrf.mxu1  ;;  %v2672_v11 = vpop.f32.mrf.mxu0 }
  0xe7   :  { %v311_v12 = vadd.f32 %v2671_v9, %v2448_v8 }
  0xe8   :  { %v2877_v13 = vpop.f32.mrf.mxu1  ;;  %v2673_v14 = vpop.f32.mrf.mxu0 }
  0xe9   :  { %v360_v15 = vadd.f32 %v359_v10, %v311_v12  ;;  %v2674_v16 = vadd.f32 %v2673_v14, %v2672_v11 }
  0xea   :  { %v2675_v17 = vpop.f32.mrf.mxu0  ;;  %v362_v20 = vpop.f32.mrf.mxu1 }
  0xeb   :  { %v3359_v18 = vmax.f32 %v360_v15, 0.0  ;;  %v314_v19 = vadd.f32 %v2674_v16, %v2448_v8 }
  0xec   :  { %v2676_v21 = vpop.f32.mrf.mxu0 }
  0xed   :  { %378 = vst [vmem:[#allocation2 + $0x2] sm:$0xff] %v3359_v18  ;;  %v363_v22 = vadd.f32 %v362_v20, %v314_v19  ;;  %v2677_v23 = vadd.f32 %v2676_v21, %v2675_v17 }
  0xee   :  { %v2678_v24 = vpop.f32.mrf.mxu0 }
  0xef   :  { %v3362_v25 = vmax.f32 %v363_v22, 0.0  ;;  %v319_v26 = vadd.f32 %v2677_v23, %v2448_v8 }
  0xf0   :  { %v2679_v27 = vpop.f32.mrf.mxu0 }
  0xf1   :  { %379 = vst [vmem:[#allocation2 + $0xa] sm:$0xff] %v3362_v25  ;;  %v368_v28 = vadd.f32 %v2876_v6, %v319_v26  ;;  %v2680_v29 = vadd.f32 %v2679_v27, %v2678_v24  ;;  %v395_v30 = vpack.c.bf16 %v3362_v25, %v3359_v18  ;;  %v3002_v6 = vld [vmem:[%s3894_s5] sm:$0xff]  }
  0xf3   :  { %v3367_v31 = vmax.f32 %v368_v28, 0.0  ;;  %v322_v32 = vadd.f32 %v2680_v29, %v2448_v8  ;;  %631 = vmatprep.mubr.bf16.mxu0 %v395_v30 }
  0xf4   :  { %v382_v35 = vld [vmem:[#allocation2] sm:$0xff] }
  0xf5   :  { %380 = vst [vmem:[#allocation2 + $0x12] sm:$0xff] %v3367_v31  ;;  %v371_v33 = vadd.f32 %v2877_v13, %v322_v32  ;;  %v2473_v13 = vld [vmem:[%s3893_s4] ss:$0 sm:$0xff] }
  0xf7   :  { %v3370_v34 = vmax.f32 %v371_v33, 0.0 }
  0xf8   :  { %v383_v36 = vld [vmem:[#allocation2 + $0x8] sm:$0xff] }
  0xf9   :  { %381 = vst [vmem:[#allocation2 + $0x1a] sm:$0xff] %v3370_v34  ;;  %v394_v38 = vpack.c.bf16 %v383_v36, %v382_v35  ;;  %v398_v39 = vpack.c.bf16 %v3370_v34, %v3367_v31  ;;  %v390_v40 = vld [vmem:[#allocation2 + $0x4] sm:$0xff] }
  0xfb   :  { %632 = vmatmul.mubr.bf16.vlgmr.msra.gmra.mxu0 %v394_v38 }
  0xfc   :  { %v391_v41 = vld [vmem:[#allocation2 + $0xc] sm:$0xff]  ;;  %639 = vmatprep.mubr.bf16.mxu0 %v398_v39  ;;  %2730 = vmatpush3.bf16.msra.mxu0 %v2981_v37 }
  0xfd   :  { %v396_v42 = vpack.c.bf16 %v391_v41, %v390_v40  ;;  %v384_v43 = vld [vmem:[#allocation2 + $0x10] sm:$0xff]  ;;  %2731 = vmatprep.subr.bf16.mxu0 %v2982_v49 }
  0xff   :  { %2894 = vmatprep.mubr.bf16.mxu1 %v396_v42 }
 0x100   :  { %v392_v44 = vld [vmem:[#allocation2 + $0x14] sm:$0xff]  ;;  %v393_v45 = vld [vmem:[#allocation2 + $0x1c] sm:$0xff]  ;;  %2732 = vmatpush3.bf16.msra.mxu0 %v2984_v51 }
 0x101   :  { %v385_v46 = vld [vmem:[#allocation2 + $0x18] sm:$0xff]  ;;  %v399_v47 = vpack.c.bf16 %v393_v45, %v392_v44  ;;  %2733 = vmatprep.subr.bf16.mxu0 %v2985_v52 }
 0x102   :  { %v397_v48 = vpack.c.bf16 %v385_v46, %v384_v43 }
 0x103   :  { %2895 = vmatmul.mubr.bf16.vlgmr.msra.gmra.mxu1 %v399_v47 }
 0x104   :  { %640 = vmatmul.mubr.bf16.gmra.mxu0 %v397_v48  ;;  %2899 = vmatpush3.bf16.msra.mxu1 %v2983_v50 }
 0x105   :  { %2900 = vmatprep.subr.bf16.mxu1 %v2986_v53  ;;  %2734 = vmatpush3.bf16.msra.mxu0 %v2987_v54 }
 0x106   :  { %2735 = vmatprep.subr.bf16.mxu0 %v2988_v55  ;;  %v1132_v55 = vld [vmem:[%s3897_s8 + $0x1c0] sm:$0xff] }
 0x108   :  { %2901 = vmatpush3.bf16.msra.mxu1 %v2986_v53 }
 0x109   :  { %2902 = vmatprep.subr.bf16.mxu1 %v2989_v56  ;;  %2736 = vmatpush3.bf16.msra.mxu0 %v2990_v57 }
 0x10a   :  { %2737 = vmatprep.subr.bf16.mxu0 %v2991_v58 }
 0x10c   :  { %2903 = vmatpush3.bf16.msra.mxu1 %v2989_v56  ;;  %v1136_v56 = vld [vmem:[%s3897_s8 + $0x1e0] sm:$0xff] }
 0x10d   :  { %2904 = vmatprep.subr.bf16.mxu1 %v2992_v59  ;;  %2738 = vmatpush3.bf16.msra.mxu0 %v2993_v60  ;;  %v2580_v57 = vcombine.low %v1132_v55, %v1136_v56  ;;  %v2581_v58 = vcombine.high %v1132_v55, %v1136_v56  ;;  %v1128_v60 = vld [vmem:[%s3897_s8 + $0x1a0] sm:$0xff] }
 0x10e   :  { %2739 = vmatprep.subr.bf16.mxu0 %v2994_v61 }
 0x110   :  { %2905 = vmatpush3.bf16.msra.mxu1 %v2992_v59  ;;  %v1124_v59 = vld [vmem:[%s3897_s8 + $0x180] sm:$0xff] }
 0x111   :  { %2906 = vmatprep.subr.bf16.mxu1 %v2995_v62  ;;  %2740 = vmatpush3.bf16.msra.mxu0 %v2996_v63  ;;  %v2573_v61 = vcombine.high %v1124_v59, %v1128_v60  ;;  %v1116_v63 = vld [vmem:[%s3897_s8 + $0x140] sm:$0xff] }
 0x112   :  { %2741 = vmatprep.subr.bf16.mxu0 %v2997_v0  ;;  %v1120_v0 = vld [vmem:[%s3897_s8 + $0x160] sm:$0xff] }
 0x114   :  { %2907 = vmatpush3.bf16.msra.mxu1 %v2995_v62  ;;  %v2572_v62 = vcombine.low %v1124_v59, %v1128_v60 }
 0x115   :  { %2908 = vmatprep.subr.bf16.mxu1 %v2998_v1  ;;  %2742 = vmatpush3.bf16.msra.mxu0 %v2999_v3  ;;  %v2564_v3 = vcombine.low %v1116_v63, %v1120_v0 }
 0x116   :  { %2743 = vmatprep.subr.bf16.mxu0 %v3000_v4  ;;  %v1108_v4 = vld [vmem:[%s3897_s8 + $0x100] sm:$0xff] }
 0x118   :  { %2909 = vmatpush3.bf16.msra.mxu1 %v2998_v1  ;;  %v2565_v1 = vcombine.high %v1116_v63, %v1120_v0  ;;  %v1129_v63 = vld [vmem:[%s3897_s8 + $0x1a8] sm:$0xff]  ;;  %v1028_v0 = vld [vmem:[%s3896_s7] sm:$0x1] }
 0x119   :  { %2910 = vmatprep.subr.bf16.mxu1 %v3001_v5  ;;  %2744 = vmatpush3.bf16.msra.mxu0 %v3002_v6 }
 0x11a   :  { %1502 = vmatprep.subr.bf16.mxu0 %v2581_v58 }
 0x11c   :  { %2911 = vmatpush3.bf16.msra.mxu1 %v3001_v5  ;;  %v1112_v5 = vld [vmem:[%s3897_s8 + $0x120] sm:$0xff] }
 0x11d   :  { %2912 = vmatprep.subr.bf16.mxu1 %v3003_v7  ;;  %v2557_v6 = vcombine.high %v1108_v4, %v1112_v5 }
 0x120   :  { %2913 = vmatpush3.bf16.msra.mxu1 %v3003_v7  ;;  %v2556_v7 = vcombine.low %v1108_v4, %v1112_v5  ;;  %v1121_v4 = vld [vmem:[%s3897_s8 + $0x168] sm:$0xff] }
 0x121   :  { %2918 = vmatprep.subr.bf16.mxu1 %v3116_v2 }
 0x1bb   :  { %v2707_v8 = vpop.f32.mrf.mxu0 }
 0x1bd   :  { %v2708_v9 = vpop.f32.mrf.mxu0 }
 0x1be   :  { %v2709_v11 = vadd.f32 %v2708_v9, %v2707_v8  ;;  %v1100_v8 = vld [vmem:[%s3897_s8 + $0xc0] sm:$0xff] }
 0x1bf   :  { %v2710_v10 = vpop.f32.mrf.mxu0  ;;  %v1104_v9 = vld [vmem:[%s3897_s8 + $0xe0] sm:$0xff] }
 0x1c0   :  { %v634_v17 = vadd.f32 %v2709_v11, %v2473_v13  ;;  %v2548_v11 = vcombine.low %v1100_v8, %v1104_v9 }
 0x1c1   :  { %v2711_v12 = vpop.f32.mrf.mxu0 }
 0x1c2   :  { %v2712_v16 = vadd.f32 %v2711_v12, %v2710_v10  ;;  %v2549_v10 = vcombine.high %v1100_v8, %v1104_v9  ;;  %v1092_v12 = vld [vmem:[%s3897_s8 + $0x80] sm:$0xff]  ;;  %v1113_v8 = vld [vmem:[%s3897_s8 + $0x128] sm:$0xff] }
 0x1c3   :  { %v2896_v14 = vpop.f32.mrf.mxu1 }
 0x1c4   :  { %v2713_v15 = vpop.f32.mrf.mxu0  ;;  %v637_v28 = vadd.f32 %v2712_v16, %v2473_v13  ;;  %v1084_v16 = vld [vmem:[%s3897_s8 + $0x40] sm:$0xff] }
 0x1c5   :  { %v682_v19 = vpop.f32.mrf.mxu1 }
 0x1c6   :  { %v2714_v20 = vpop.f32.mrf.mxu0  ;;  %v683_v21 = vadd.f32 %v682_v19, %v634_v17  ;;  %v1088_v17 = vld [vmem:[%s3897_s8 + $0x60] sm:$0xff] }
 0x1c7   :  { %v2715_v22 = vadd.f32 %v2714_v20, %v2713_v15  ;;  %v2897_v23 = vpop.f32.mrf.mxu1  ;;  %v2533_v19 = vcombine.high %v1084_v16, %v1088_v17  ;;  %v2532_v20 = vcombine.low %v1084_v16, %v1088_v17  ;;  %v1097_v16 = vld [vmem:[%s3897_s8 + $0xa8] sm:$0xff] }
 0x1c8   :  { %v2716_v24 = vpop.f32.mrf.mxu0  ;;  %v697_v26 = vmax.f32 %v683_v21, 0.0  ;;  %v1076_v21 = vld [vmem:[%s3897_s8] sm:$0xff] }
 0x1c9   :  { %v642_v27 = vadd.f32 %v2715_v22, %v2473_v13  ;;  %v685_v29 = vpop.f32.mrf.mxu1  ;;  %v1080_v22 = vld [vmem:[%s3897_s8 + $0x20] sm:$0xff] }
 0x1ca   :  { %v2717_v30 = vpop.f32.mrf.mxu0  ;;  %701 = vst [vmem:[#allocation2 + $0x2] sm:$0xff] %v697_v26  ;;  %v686_v33 = vadd.f32 %v685_v29, %v637_v28 }
 0x1cb   :  { %v691_v32 = vadd.f32 %v2896_v14, %v642_v27  ;;  %v2718_v35 = vadd.f32 %v2717_v30, %v2716_v24  ;;  %v2524_v24 = vcombine.low %v1076_v21, %v1080_v22 }
 0x1cc   :  { %v698_v37 = vmax.f32 %v686_v33, 0.0 }
 0x1cd   :  { %v699_v36 = vmax.f32 %v691_v32, 0.0  ;;  %v645_v38 = vadd.f32 %v2718_v35, %v2473_v13  ;;  %v1096_v13 = vld [vmem:[%s3897_s8 + $0xa0] sm:$0xff] }
 0x1ce   :  { %702 = vst [vmem:[#allocation2 + $0xa] sm:$0xff] %v698_v37  ;;  %v718_v40 = vpack.c.bf16 %v698_v37, %v697_v26  ;;  %v2541_v14 = vcombine.high %v1092_v12, %v1096_v13  ;;  %v2540_v15 = vcombine.low %v1092_v12, %v1096_v13  ;;  %v1105_v12 = vld [vmem:[%s3897_s8 + $0xe8] sm:$0xff] }
 0x1cf   :  { %703 = vst [vmem:[#allocation2 + $0x12] sm:$0xff] %v699_v36  ;;  %v694_v39 = vadd.f32 %v2897_v23, %v645_v38  ;;  %v2525_v23 = vcombine.high %v1076_v21, %v1080_v22  ;;  %v1089_v21 = vld [vmem:[%s3897_s8 + $0x68] sm:$0xff] }
 0x1d0   :  { %954 = vmatprep.mubr.bf16.mxu0 %v718_v40  ;;  %v2498_v40 = vld [vmem:[%s3895_s6] ss:$0 sm:$0xff] }
 0x1d1   :  { %v700_v41 = vmax.f32 %v694_v39, 0.0  ;;  %v705_v42 = vld [vmem:[#allocation2] sm:$0xff] }
 0x1d3   :  { %704 = vst [vmem:[#allocation2 + $0x1a] sm:$0xff] %v700_v41  ;;  %v721_v48 = vpack.c.bf16 %v700_v41, %v699_v36 }
 0x1d5   :  { %v706_v43 = vld [vmem:[#allocation2 + $0x8] sm:$0xff] }
 0x1d6   :  { %v713_v44 = vld [vmem:[#allocation2 + $0x4] sm:$0xff]  ;;  %v714_v45 = vld [vmem:[#allocation2 + $0xc] sm:$0xff]  ;;  %v717_v46 = vpack.c.bf16 %v706_v43, %v705_v42 }
 0x1d7   :  { %v719_v47 = vpack.c.bf16 %v714_v45, %v713_v44  ;;  %v707_v53 = vld [vmem:[#allocation2 + $0x10] sm:$0xff] }
 0x1d8   :  { %955 = vmatmul.mubr.bf16.vlgmr.msra.gmra.mxu0 %v717_v46 }
 0x1d9   :  { %2914 = vmatprep.mubr.bf16.mxu1 %v719_v47  ;;  %962 = vmatprep.mubr.bf16.mxu0 %v721_v48 }
 0x1da   :  { %v715_v49 = vld [vmem:[#allocation2 + $0x14] sm:$0xff]  ;;  %v716_v50 = vld [vmem:[#allocation2 + $0x1c] sm:$0xff]  ;;  %1503 = vmatpush1.bf16.msra.mxu0 %v2580_v57 }
 0x1db   :  { %v722_v51 = vpack.c.bf16 %v716_v50, %v715_v49  ;;  %v708_v52 = vld [vmem:[#allocation2 + $0x18] sm:$0xff]  ;;  %1504 = vmatprep.subr.bf16.mxu0 %v2573_v61  ;;  %v1133_v61 = vld [vmem:[%s3897_s8 + $0x1c8] sm:$0xff] }
 0x1dc   :  { %v720_v54 = vpack.c.bf16 %v708_v52, %v707_v53 }
 0x1dd   :  { %2915 = vmatmul.mubr.bf16.vlgmr.msra.gmra.mxu1 %v722_v51 }
 0x1de   :  { %2922 = vmatprep.mubr.msk.bf16.mxu1 %vm3117_vm0, %v3116_v2  ;;  %1505 = vmatpush1.bf16.msra.mxu0 %v2572_v62  ;;  %v1137_v62 = vld [vmem:[%s3897_s8 + $0x1e8] sm:$0xff] }
 0x1df   :  { %1506 = vmatprep.subr.bf16.mxu0 %v2565_v1  ;;  %v2582_v1 = vcombine.low %v1133_v61, %v1137_v62 }
 0x1e0   :  { %963 = vmatmul.mubr.bf16.gmra.mxu0 %v720_v54 }
 0x1e2   :  { %1507 = vmatpush1.bf16.msra.mxu0 %v2564_v3 }
 0x1e3   :  { %1508 = vmatprep.subr.bf16.mxu0 %v2557_v6 }
 0x1e6   :  { %1509 = vmatpush1.bf16.msra.mxu0 %v2556_v7  ;;  %v1109_v7 = vld [vmem:[%s3897_s8 + $0x108] sm:$0xff] }
 0x1e7   :  { %1510 = vmatprep.subr.bf16.mxu0 %v2549_v10  ;;  %v2559_v10 = vcombine.high %v1109_v7, %v1113_v8  ;;  %v2558_v13 = vcombine.low %v1109_v7, %v1113_v8  ;;  %v1094_v8 = vld [vmem:[%s3897_s8 + $0x90] sm:$0xff] }
 0x1ea   :  { %1511 = vmatpush1.bf16.msra.mxu0 %v2548_v11  ;;  %v1101_v11 = vld [vmem:[%s3897_s8 + $0xc8] sm:$0xff] }
 0x1eb   :  { %1512 = vmatprep.subr.bf16.mxu0 %v2541_v14  ;;  %v2551_v14 = vcombine.high %v1101_v11, %v1105_v12  ;;  %v2550_v17 = vcombine.low %v1101_v11, %v1105_v12  ;;  %v1099_v11 = vld [vmem:[%s3897_s8 + $0xb8] sm:$0xff] }
 0x1ee   :  { %1513 = vmatpush1.bf16.msra.mxu0 %v2540_v15  ;;  %v1093_v15 = vld [vmem:[%s3897_s8 + $0x88] sm:$0xff] }
 0x1ef   :  { %1514 = vmatprep.subr.bf16.mxu0 %v2533_v19  ;;  %v2543_v19 = vcombine.high %v1093_v15, %v1097_v16  ;;  %v2542_v22 = vcombine.low %v1093_v15, %v1097_v16  ;;  %v1086_v16 = vld [vmem:[%s3897_s8 + $0x50] sm:$0xff] }
 0x1f2   :  { %1515 = vmatpush1.bf16.msra.mxu0 %v2532_v20  ;;  %v1085_v20 = vld [vmem:[%s3897_s8 + $0x48] sm:$0xff] }
 0x1f3   :  { %1516 = vmatprep.subr.bf16.mxu0 %v2525_v23  ;;  %v2535_v23 = vcombine.high %v1085_v20, %v1089_v21 }
 0x1f6   :  { %1517 = vmatpush1.bf16.msra.mxu0 %v2524_v24  ;;  %v1077_v24 = vld [vmem:[%s3897_s8 + $0x8] sm:$0xff] }
 0x298   :  { %v2745_v26 = vpop.f32.mrf.mxu0 }
 0x29a   :  { %v2746_v27 = vpop.f32.mrf.mxu0 }
 0x29b   :  { %v2747_v38 = vadd.f32 %v2746_v27, %v2745_v26  ;;  %v1081_v26 = vld [vmem:[%s3897_s8 + $0x28] sm:$0xff]  ;;  %v2534_v27 = vcombine.low %v1085_v20, %v1089_v21  ;;  %v1091_v20 = vld [vmem:[%s3897_s8 + $0x78] sm:$0xff] }
 0x29c   :  { %v2748_v28 = vpop.f32.mrf.mxu0 }
 0x29d   :  { %v2916_v29 = vpop.f32.mrf.mxu1  ;;  %v957_v46 = vadd.f32 %v2747_v38, %v2498_v40 }
 0x29e   :  { %v2749_v30 = vpop.f32.mrf.mxu0 }
 0x29f   :  { %v1005_v32 = vpop.f32.mrf.mxu1  ;;  %v2750_v35 = vadd.f32 %v2749_v30, %v2748_v28  ;;  %v2527_v28 = vcombine.high %v1077_v24, %v1081_v26  ;;  %v1134_v30 = vld [vmem:[%s3897_s8 + $0x1d0] sm:$0xff] }
 0x2a0   :  { %v2751_v33 = vpop.f32.mrf.mxu0  ;;  %v1006_v51 = vadd.f32 %v1005_v32, %v957_v46  ;;  %v1138_v32 = vld [vmem:[%s3897_s8 + $0x1f0] sm:$0xff] }
 0x2a1   :  { %v2917_v36 = vpop.f32.mrf.mxu1  ;;  %v960_v43 = vadd.f32 %v2750_v35, %v2498_v40  ;;  %v2585_v35 = vcombine.high %v1134_v30, %v1138_v32 }
 0x2a2   :  { %v2752_v37 = vpop.f32.mrf.mxu0  ;;  %v1020_v56 = vadd.f32 %v1006_v51, %v3359_v18  ;;  %v1125_v18 = vld [vmem:[%s3897_s8 + $0x188] sm:$0xff]  ;;  %v1122_v51 = vld [vmem:[%s3897_s8 + $0x170] sm:$0xff] }
 0x2a3   :  { %v2753_v39 = vadd.f32 %v2752_v37, %v2751_v33  ;;  %v1008_v44 = vpop.f32.mrf.mxu1  ;;  %v2575_v3 = vcombine.high %v1125_v18, %v1129_v63  ;;  %v2574_v5 = vcombine.low %v1125_v18, %v1129_v63  ;;  %v1135_v33 = vld [vmem:[%s3897_s8 + $0x1d8] sm:$0xff]  ;;  %v2584_v37 = vcombine.low %v1134_v30, %v1138_v32  ;;  %1584 = vmatprep.subr.bf16.mxu0 %v2585_v35 }
 0x2a4   :  { %v2754_v41 = vpop.f32.mrf.mxu0  ;;  %v1009_v49 = vadd.f32 %v1008_v44, %v960_v43  ;;  %v1127_v43 = vld [vmem:[%s3897_s8 + $0x198] sm:$0xff] }
 0x2a5   :  { %v965_v42 = vadd.f32 %v2753_v39, %v2498_v40  ;;  %v1131_v44 = vld [vmem:[%s3897_s8 + $0x1b8] sm:$0xff] }
 0x2a6   :  { %v2755_v45 = vpop.f32.mrf.mxu0  ;;  %v1021_v54 = vadd.f32 %v1009_v49, %v3362_v25  ;;  %v2583_v25 = vcombine.high %v1133_v61, %v1137_v62  ;;  %v1118_v49 = vld [vmem:[%s3897_s8 + $0x150] sm:$0xff]  ;;  %v1111_v62 = vld [vmem:[%s3897_s8 + $0x118] sm:$0xff] }
 0x2a7   :  { %v1014_v47 = vadd.f32 %v2916_v29, %v965_v42  ;;  %v2756_v48 = vadd.f32 %v2755_v45, %v2754_v41  ;;  %v2526_v29 = vcombine.low %v1077_v24, %v1081_v26  ;;  %v1126_v41 = vld [vmem:[%s3897_s8 + $0x190] sm:$0xff] }
 0x2a8   :  { %v1025_v59 = vmax.f32 %v1021_v54, 0.0  ;;  %v1130_v42 = vld [vmem:[%s3897_s8 + $0x1b0] sm:$0xff] }
 0x2a9   :  { %v968_v50 = vadd.f32 %v2756_v48, %v2498_v40  ;;  %v1022_v52 = vadd.f32 %v1014_v47, %v3367_v31  ;;  %v1024_v31 = vmax.f32 %v1020_v56, 0.0  ;;  %v3118_v40 = vmov 0   ;;  %v1114_v61 = vld [vmem:[%s3897_s8 + $0x130] sm:$0xff] }
 0x2aa   :  { %1534 = vmatprep.mubr.bf16.mxu0 %v3118_v40  ;;  %v2577_v47 = vcombine.high %v1126_v41, %v1130_v42  ;;  %v2579_v48 = vcombine.high %v1127_v43, %v1131_v44  ;;  %v2578_v56 = vcombine.low %v1127_v43, %v1131_v44  ;;  %v1078_v26 = vld [vmem:[%s3897_s8 + $0x10] sm:$0xff] }
 0x2ab   :  { %v1017_v53 = vadd.f32 %v2917_v36, %v968_v50  ;;  %v1026_v57 = vmax.f32 %v1022_v52, 0.0  ;;  %v1139_v36 = vld [vmem:[%s3897_s8 + $0x1f8] sm:$0xff]  ;;  %v3009_v43 = vld [vmem:[%s3899_s10 + $0xf0] sm:$0xff]  }
 0x2ac   :  { %v2586_v38 = vcombine.low %v1135_v33, %v1139_v36  ;;  %v2587_v39 = vcombine.high %v1135_v33, %v1139_v36  ;;  %v1119_v52 = vld [vmem:[%s3897_s8 + $0x158] sm:$0xff]  ;;  %v3010_v44 = vld [vmem:[%s3899_s10 + $0x30] sm:$0xff]  }
 0x2ad   :  { %v1023_v55 = vadd.f32 %v1017_v53, %v3370_v34  ;;  %v1029_v34 = vpack.c.bf16 %v1025_v59, %v1024_v31  ;;  %v1123_v53 = vld [vmem:[%s3897_s8 + $0x178] sm:$0xff]  ;;  %v1110_v59 = vld [vmem:[%s3897_s8 + $0x110] sm:$0xff] }
 0x2ae   :  { %v1115_v31 = vld [vmem:[%s3897_s8 + $0x138] sm:$0xff]  ;;  %v2561_v18 = vcombine.high %v1110_v59, %v1114_v61 }
 0x2af   :  { %v1027_v58 = vmax.f32 %v1023_v55, 0.0  ;;  %v2576_v55 = vcombine.low %v1126_v41, %v1130_v42  ;;  %v2563_v63 = vcombine.high %v1111_v62, %v1115_v31  ;;  %v3007_v41 = vld [vmem:[%s3899_s10 + $0xb8] sm:$0xff]   ;;  %v3008_v42 = vld [vmem:[%s3899_s10 + $0x70] sm:$0xff]  }
 0x2b1   :  { %v1030_v60 = vpack.c.bf16 %v1027_v58, %v1026_v57  ;;  %v2569_v57 = vcombine.high %v1118_v49, %v1122_v51  ;;  %v2571_v58 = vcombine.high %v1119_v52, %v1123_v53 }
 0x2b3   :  { %2919 = vmatpush3.bf16.msra.mxu1 %v1030_v60 }
 0x2b4   :  { %2920 = vmatprep.subr.bf16.mxu1 %v3116_v2  ;;  %v1117_v2 = vld [vmem:[%s3897_s8 + $0x148] sm:$0xff] }
 0x2b5   :  { %v2567_v6 = vcombine.high %v1117_v2, %v1121_v4  ;;  %v2566_v9 = vcombine.low %v1117_v2, %v1121_v4  ;;  %v1107_v2 = vld [vmem:[%s3897_s8 + $0xf8] sm:$0xff]  ;;  %v2560_v4 = vcombine.low %v1110_v59, %v1114_v61  ;;  %v3025_v59 = vld [vmem:[%s3899_s10 + $0xd0] sm:$0xff]  }
 0x2b6   :  { %v3027_v61 = vld [vmem:[%s3899_s10 + $0x90] sm:$0xff]  }
 0x2b7   :  { %2921 = vmatpush3.bf16.msra.mxu1 %v1029_v34  ;;  %v2570_v34 = vcombine.low %v1119_v52, %v1123_v53  ;;  %v3018_v52 = vld [vmem:[%s3899_s10 + $0x20] sm:$0xff]  }
 0x2b8   :  { %1543 = vmatprep.subr.bf16.mxu1 %v2583_v25  ;;  %v2568_v25 = vcombine.low %v1118_v49, %v1122_v51  ;;  %v3015_v49 = vld [vmem:[%s3899_s10 + $0xa8] sm:$0xff]   ;;  %v3017_v51 = vld [vmem:[%s3899_s10 + $0xe0] sm:$0xff]  }
 0x2b9   :  { %v3019_v53 = vld [vmem:[%s3899_s10 + $0xa0] sm:$0xff]  }
 0x2ba   :  { %2923 = vmatmul.mubr.msk.bf16.vlgmr.msra.gmra.mxu1 %vm1031_vm1, %v1028_v0  ;;  %v1102_v0 = vld [vmem:[%s3897_s8 + $0xd0] sm:$0xff] }
 0x2bb   :  { %1544 = vmatpush1.bf16.msra.mxu1 %v2582_v1  ;;  %1575 = vmatprep.mubr.bf16.mxu1 %v3118_v40  ;;  %v1106_v1 = vld [vmem:[%s3897_s8 + $0xf0] sm:$0xff] }
 0x2bc   :  { %1545 = vmatprep.subr.bf16.mxu1 %v2575_v3  ;;  %v1103_v3 = vld [vmem:[%s3897_s8 + $0xd8] sm:$0xff]  ;;  %v2552_v12 = vcombine.low %v1102_v0, %v1106_v1 }
 0x2bd   :  { %v2555_v7 = vcombine.high %v1103_v3, %v1107_v2 }
 0x2bf   :  { %1546 = vmatpush1.bf16.msra.mxu1 %v2574_v5  ;;  %v2562_v5 = vcombine.low %v1111_v62, %v1115_v31  ;;  %v3028_v62 = vld [vmem:[%s3899_s10 + $0x48] sm:$0xff]  }
 0x2c0   :  { %1547 = vmatprep.subr.bf16.mxu1 %v2567_v6  ;;  %v2553_v6 = vcombine.high %v1102_v0, %v1106_v1  ;;  %v3029_v31 = vld [vmem:[%s3899_s10 + $0xc8] sm:$0xff]   ;;  %v3034_v0 = vld [vmem:[%s3899_s10] sm:$0xff]  }
 0x2c1   :  { %v3035_v1 = vld [vmem:[%s3899_s10 + $0x80] sm:$0xff]  }
 0x2c3   :  { %1548 = vmatpush1.bf16.msra.mxu1 %v2566_v9  ;;  %v1098_v9 = vld [vmem:[%s3897_s8 + $0xb0] sm:$0xff] }
 0x2c4   :  { %1549 = vmatprep.subr.bf16.mxu1 %v2559_v10  ;;  %v1095_v10 = vld [vmem:[%s3897_s8 + $0x98] sm:$0xff]  ;;  %v2544_v21 = vcombine.low %v1094_v8, %v1098_v9 }
 0x2c5   :  { %v2547_v15 = vcombine.high %v1095_v10, %v1099_v11 }
 0x2c7   :  { %1550 = vmatpush1.bf16.msra.mxu1 %v2558_v13  ;;  %v2554_v13 = vcombine.low %v1103_v3, %v1107_v2  ;;  %v3036_v3 = vld [vmem:[%s3899_s10 + $0x178] sm:$0xff]  }
 0x2c8   :  { %1551 = vmatprep.subr.bf16.mxu1 %v2551_v14  ;;  %v2545_v14 = vcombine.high %v1094_v8, %v1098_v9  ;;  %v3037_v2 = vld [vmem:[%s3899_s10 + $0x1f8] sm:$0xff]   ;;  %v3767_v8 = vld [vmem:[%s3898_s9] sm:$0xff] }
 0x2cb   :  { %1552 = vmatpush1.bf16.msra.mxu1 %v2550_v17  ;;  %v1090_v17 = vld [vmem:[%s3897_s8 + $0x70] sm:$0xff] }
 0x2cc   :  { %1553 = vmatprep.subr.bf16.mxu1 %v2543_v19  ;;  %v1087_v19 = vld [vmem:[%s3897_s8 + $0x58] sm:$0xff]  ;;  %v2536_v30 = vcombine.low %v1086_v16, %v1090_v17 }
 0x2cd   :  { %v2539_v24 = vcombine.high %v1087_v19, %v1091_v20  ;;  %v2538_v32 = vcombine.low %v1087_v19, %v1091_v20 }
 0x2cf   :  { %1554 = vmatpush1.bf16.msra.mxu1 %v2542_v22  ;;  %v2546_v22 = vcombine.low %v1095_v10, %v1099_v11  ;;  %v3119_v11 = vmov 1983009808  }
 0x2d0   :  { %1555 = vmatprep.subr.bf16.mxu1 %v2535_v23  ;;  %v2537_v23 = vcombine.high %v1086_v16, %v1090_v17 }
 0x2d3   :  { %1556 = vmatpush1.bf16.msra.mxu1 %v2534_v27  ;;  %v1082_v27 = vld [vmem:[%s3897_s8 + $0x30] sm:$0xff] }
 0x2d4   :  { %1557 = vmatprep.subr.bf16.mxu1 %v2527_v28  ;;  %v1079_v28 = vld [vmem:[%s3897_s8 + $0x18] sm:$0xff]  ;;  %v2529_v33 = vcombine.high %v1078_v26, %v1082_v27  ;;  %v2528_v36 = vcombine.low %v1078_v26, %v1082_v27 }
 0x2d7   :  { %1558 = vmatpush1.bf16.msra.mxu1 %v2526_v29  ;;  %v1083_v29 = vld [vmem:[%s3897_s8 + $0x38] sm:$0xff] }
 0x2d8   :  { %1625 = vmatprep.subr.bf16.mxu1 %v2587_v39  ;;  %v2531_v35 = vcombine.high %v1079_v28, %v1083_v29  ;;  %v3005_v39 = vld [vmem:[%s3899_s10 + $0xf8] sm:$0xff]  }
 0x37a   :  { %v1069_v45 = vpop.f32.mrf.mxu1 }
 0x37b   :  { %v3580_v46 = vpack.c.bf16 %v1069_v45, %v1069_v45  ;;  %v3011_v45 = vld [vmem:[%s3899_s10 + $0xb0] sm:$0xff]  }
 0x37c   :  { %v2924_v50 = vpop.f32.mrf.mxu1 }
 0x37d   :  { %1535 = vmatmul.mubr.bf16.vlgmr.msra.gmra.mxu0 %v3580_v46  ;;  %1576 = vmatmul.mubr.bf16.vlgmr.msra.gmra.mxu1 %v3580_v46  ;;  %v3016_v50 = vld [vmem:[%s3899_s10 + $0x60] sm:$0xff]  }
 0x37e   :  { %1585 = vmatpush1.bf16.msra.mxu0 %v2584_v37  ;;  %1626 = vmatpush1.bf16.msra.mxu1 %v2586_v38  ;;  %v1072_v54 = vpop.f32.mrf.mxu1  ;;  %v2530_v37 = vcombine.low %v1079_v28, %v1083_v29  ;;  %v3004_v38 = vld [vmem:[%s3899_s10 + $0x78] sm:$0xff]  }
 0x37f   :  { %1586 = vmatprep.subr.bf16.mxu0 %v2577_v47  ;;  %1627 = vmatprep.subr.bf16.mxu1 %v2579_v48  ;;  %v3012_v47 = vld [vmem:[%s3899_s10 + $0x68] sm:$0xff]   ;;  %v3020_v54 = vld [vmem:[%s3899_s10 + $0x58] sm:$0xff]  }
 0x380   :  { %v2925_v60 = vpop.f32.mrf.mxu1  ;;  %1616 = vmatprep.mubr.bf16.mxu0 %v3118_v40  ;;  %1657 = vmatprep.mubr.bf16.mxu1 %v3118_v40  ;;  %v3006_v40 = vld [vmem:[%s3899_s10 + $0x38] sm:$0xff]   ;;  %v3014_v48 = vld [vmem:[%s3899_s10 + $0x28] sm:$0xff]  }
 0x381   :  { %v3026_v60 = vld [vmem:[%s3899_s10 + $0x10] sm:$0xff]  }
 0x382   :  { %1587 = vmatpush1.bf16.msra.mxu0 %v2576_v55  ;;  %1628 = vmatpush1.bf16.msra.mxu1 %v2578_v56  ;;  %v3021_v55 = vld [vmem:[%s3899_s10 + $0xd8] sm:$0xff]  }
 0x383   :  { %1588 = vmatprep.subr.bf16.mxu0 %v2569_v57  ;;  %1629 = vmatprep.subr.bf16.mxu1 %v2571_v58  ;;  %v3022_v56 = vld [vmem:[%s3899_s10 + $0x18] sm:$0xff]   ;;  %v3024_v58 = vld [vmem:[%s3899_s10 + $0x50] sm:$0xff]  }
 0x384   :  { %v3023_v57 = vld [vmem:[%s3899_s10 + $0x98] sm:$0xff]  }
 0x386   :  { %1589 = vmatpush1.bf16.msra.mxu0 %v2568_v25  ;;  %1630 = vmatpush1.bf16.msra.mxu1 %v2570_v34  ;;  %v3030_v25 = vld [vmem:[%s3899_s10 + $0x8] sm:$0xff]  }
 0x387   :  { %1590 = vmatprep.subr.bf16.mxu0 %v2561_v18  ;;  %1631 = vmatprep.subr.bf16.mxu1 %v2563_v63  ;;  %v3031_v34 = vld [vmem:[%s3899_s10 + $0x88] sm:$0xff]   ;;  %v3032_v18 = vld [vmem:[%s3899_s10 + $0x40] sm:$0xff]  }
 0x388   :  { %v3033_v63 = vld [vmem:[%s3899_s10 + $0xc0] sm:$0xff]  }
 0x38a   :  { %1591 = vmatpush1.bf16.msra.mxu0 %v2560_v4  ;;  %1632 = vmatpush1.bf16.msra.mxu1 %v2562_v5  ;;  %v1142_v4 = vlaneseq }
 0x38b   :  { %1592 = vmatprep.subr.bf16.mxu0 %v2553_v6  ;;  %1633 = vmatprep.subr.bf16.mxu1 %v2555_v7 }
 0x38c   :  { %v3760_v5 = vshrl.u32 %v1142_v4, 7 }
 0x38e   :  { %1593 = vmatpush1.bf16.msra.mxu0 %v2552_v12  ;;  %1634 = vmatpush1.bf16.msra.mxu1 %v2554_v13  ;;  %v1144_v6 = vsub.s32 0, %v3760_v5  ;;  %v1152_v7 = vsub.s32 2, %v3760_v5  ;;  %v1148_v9 = vsub.s32 1, %v3760_v5  ;;  %v1156_v10 = vsub.s32 3, %v3760_v5 }
 0x38f   :  { %1594 = vmatprep.subr.bf16.mxu0 %v2545_v14  ;;  %1635 = vmatprep.subr.bf16.mxu1 %v2547_v15  ;;  %v1677_v12 = vunpack.c.l.s4 %v3119_v11  ;;  %v1172_v4 = vsub.s32 7, %v3760_v5  ;;  %v3061_v11 = vld [vmem:[%s3899_s10 + $0x1c8] sm:$0xff]  }
 0x390   :  { %v1145_v13 = vrot.slane %v3767_v8, %v1144_v6  ;;  %v1153_v14 = vrot.slane %v3767_v8, %v1152_v7  ;;  %v1149_v15 = vrot.slane %v3767_v8, %v1148_v9  ;;  %v1157_v16 = vrot.slane %v3767_v8, %v1156_v10  ;;  %v3059_v6 = vld [vmem:[%s3899_s10 + $0x190] sm:$0xff]   ;;  %v3060_v7 = vld [vmem:[%s3899_s10 + $0x148] sm:$0xff]  }
 0x391   :  { %v1678_v17 = vunpack.c.0.s8 %v1677_v12  ;;  %v1173_v12 = vrot.slane %v3767_v8, %v1172_v4 }
 0x392   :  { %1595 = vmatpush1.bf16.msra.mxu0 %v2544_v21  ;;  %1636 = vmatpush1.bf16.msra.mxu1 %v2546_v22 }
 0x393   :  { %1596 = vmatprep.subr.bf16.mxu0 %v2537_v23  ;;  %1637 = vmatprep.subr.bf16.mxu1 %v2539_v24  ;;  %v3776_v28 = vsub.s32 %v1678_v17, %v3760_v5  ;;  %v3064_v17 = vld [vmem:[%s3899_s10 + $0x140] sm:$0xff]  }
 0x396   :  { %1597 = vmatpush1.bf16.msra.mxu0 %v2536_v30  ;;  %1638 = vmatpush1.bf16.msra.mxu1 %v2538_v32 }
 0x397   :  { %1598 = vmatprep.subr.bf16.mxu0 %v2529_v33  ;;  %1639 = vmatprep.subr.bf16.mxu1 %v2531_v35 }
 0x39a   :  { %1599 = vmatpush1.bf16.msra.mxu0 %v2528_v36  ;;  %1640 = vmatpush1.bf16.msra.mxu1 %v2530_v37 }
 0x39b   :  { %2770 = vmatprep.subr.bf16.mxu0 %v3004_v38  ;;  %2792 = vmatprep.subr.bf16.mxu1 %v3005_v39 }
 0x39d   :  { %1617 = vmatmul.mubr.bf16.vlgmr.msra.gmra.mxu0 %v3580_v46  ;;  %1658 = vmatmul.mubr.bf16.vlgmr.msra.gmra.mxu1 %v3580_v46  ;;  %v3013_v46 = vld [vmem:[%s3899_s10 + $0xe8] sm:$0xff]  }
 0x39e   :  { %2771 = vmatpush3.bf16.msra.mxu0 %v3006_v40  ;;  %2793 = vmatpush3.bf16.msra.mxu1 %v3007_v41 }
 0x39f   :  { %2772 = vmatprep.subr.bf16.mxu0 %v3008_v42  ;;  %2794 = vmatprep.subr.bf16.mxu1 %v3009_v43  ;;  %v3038_v42 = vld [vmem:[%s3899_s10 + $0x138] sm:$0xff]  }
 0x3a2   :  { %2773 = vmatpush3.bf16.msra.mxu0 %v3010_v44  ;;  %2795 = vmatpush3.bf16.msra.mxu1 %v3011_v45 }
 0x3a3   :  { %2774 = vmatprep.subr.bf16.mxu0 %v3012_v47  ;;  %2796 = vmatprep.subr.bf16.mxu1 %v3013_v46  ;;  %v3039_v47 = vld [vmem:[%s3899_s10 + $0x1b8] sm:$0xff]   ;;  %v3040_v46 = vld [vmem:[%s3899_s10 + $0x170] sm:$0xff]  }
 0x3a6   :  { %2775 = vmatpush3.bf16.msra.mxu0 %v3014_v48  ;;  %2797 = vmatpush3.bf16.msra.mxu1 %v3015_v49 }
 0x3a7   :  { %2776 = vmatprep.subr.bf16.mxu0 %v3016_v50  ;;  %2798 = vmatprep.subr.bf16.mxu1 %v3017_v51  ;;  %v3041_v50 = vld [vmem:[%s3899_s10 + $0x1f0] sm:$0xff]  }
 0x3aa   :  { %2777 = vmatpush3.bf16.msra.mxu0 %v3018_v52  ;;  %2799 = vmatpush3.bf16.msra.mxu1 %v3019_v53  ;;  %v3042_v52 = vld [vmem:[%s3899_s10 + $0x130] sm:$0xff]  }
 0x3ab   :  { %2778 = vmatprep.subr.bf16.mxu0 %v3020_v54  ;;  %2800 = vmatprep.subr.bf16.mxu1 %v3021_v55  ;;  %v3043_v53 = vld [vmem:[%s3899_s10 + $0x1b0] sm:$0xff]   ;;  %v3044_v54 = vld [vmem:[%s3899_s10 + $0x168] sm:$0xff]  }
 0x3ac   :  { %v3045_v55 = vld [vmem:[%s3899_s10 + $0x1e8] sm:$0xff]  }
 0x3ae   :  { %2779 = vmatpush3.bf16.msra.mxu0 %v3022_v56  ;;  %2801 = vmatpush3.bf16.msra.mxu1 %v3023_v57  ;;  %v3046_v56 = vld [vmem:[%s3899_s10 + $0x128] sm:$0xff]  }
 0x3af   :  { %2780 = vmatprep.subr.bf16.mxu0 %v3024_v58  ;;  %2802 = vmatprep.subr.bf16.mxu1 %v3025_v59  ;;  %v3047_v57 = vld [vmem:[%s3899_s10 + $0x1a8] sm:$0xff]   ;;  %v3048_v58 = vld [vmem:[%s3899_s10 + $0x160] sm:$0xff]  }
 0x3b0   :  { %v3049_v59 = vld [vmem:[%s3899_s10 + $0x1e0] sm:$0xff]  }
 0x3b2   :  { %2781 = vmatpush3.bf16.msra.mxu0 %v3026_v60  ;;  %2803 = vmatpush3.bf16.msra.mxu1 %v3027_v61  ;;  %v3050_v60 = vld [vmem:[%s3899_s10 + $0x120] sm:$0xff]  }
 0x3b3   :  { %2782 = vmatprep.subr.bf16.mxu0 %v3028_v62  ;;  %2804 = vmatprep.subr.bf16.mxu1 %v3029_v31  ;;  %v3051_v61 = vld [vmem:[%s3899_s10 + $0x1a0] sm:$0xff]   ;;  %v3052_v62 = vld [vmem:[%s3899_s10 + $0x158] sm:$0xff]  }
 0x3b4   :  { %v3053_v31 = vld [vmem:[%s3899_s10 + $0x1d8] sm:$0xff]  }
 0x3b6   :  { %2783 = vmatpush3.bf16.msra.mxu0 %v3030_v25  ;;  %2805 = vmatpush3.bf16.msra.mxu1 %v3031_v34  ;;  %v3054_v25 = vld [vmem:[%s3899_s10 + $0x118] sm:$0xff]  }
 0x3b7   :  { %2784 = vmatprep.subr.bf16.mxu0 %v3032_v18  ;;  %2806 = vmatprep.subr.bf16.mxu1 %v3033_v63  ;;  %v3055_v34 = vld [vmem:[%s3899_s10 + $0x198] sm:$0xff]   ;;  %v3056_v18 = vld [vmem:[%s3899_s10 + $0x150] sm:$0xff]  }
 0x3b8   :  { %v3057_v63 = vld [vmem:[%s3899_s10 + $0x1d0] sm:$0xff]  }
 0x3ba   :  { %2785 = vmatpush3.bf16.msra.mxu0 %v3034_v0  ;;  %2807 = vmatpush3.bf16.msra.mxu1 %v3035_v1  ;;  %v1160_v0 = vsub.s32 4, %v3760_v5  ;;  %v1168_v1 = vsub.s32 6, %v3760_v5 }
 0x3bb   :  { %2814 = vmatprep.subr.bf16.mxu0 %v3036_v3  ;;  %2836 = vmatprep.subr.bf16.mxu1 %v3037_v2  ;;  %v3058_v3 = vld [vmem:[%s3899_s10 + $0x110] sm:$0xff]   ;;  %v1164_v2 = vsub.s32 5, %v3760_v5 }
 0x3bc   :  { %v1161_v9 = vrot.slane %v3767_v8, %v1160_v0  ;;  %v1169_v10 = vrot.slane %v3767_v8, %v1168_v1 }
 0x3bd   :  { %v1165_v5 = vrot.slane %v3767_v8, %v1164_v2  ;;  %v3065_v8 = vld [vmem:[%s3899_s10 + $0x1c0] sm:$0xff]  }
 0x43d   :  { %v1536_v19 = vpop.f32.mrf.mxu0  ;;  %v1577_v20 = vpop.f32.mrf.mxu1 }
 0x43e   :  { %v1537_v21 = vadd.f32 %v1536_v19, %v1145_v13  ;;  %v1578_v22 = vadd.f32 %v1577_v20, %v1153_v14  ;;  %v3062_v13 = vld [vmem:[%s3899_s10 + $0x108] sm:$0xff]  }
 0x43f   :  { %v1538_v23 = vpop.f32.mrf.mxu0  ;;  %v1579_v24 = vpop.f32.mrf.mxu1 }
 0x440   :  { %v1539_v26 = vadd.f32 %v1538_v23, %v1149_v15  ;;  %v1580_v27 = vadd.f32 %v1579_v24, %v1157_v16  ;;  %v1712_v29 = vmax.f32 %v1537_v21, 0.0  ;;  %v1714_v33 = vmax.f32 %v1578_v22, 0.0  ;;  %v3063_v16 = vld [vmem:[%s3899_s10 + $0x188] sm:$0xff]  }
 0x441   :  { %v1540_v30 = vpop.f32.mrf.mxu0  ;;  %v1581_v32 = vpop.f32.mrf.mxu1 }
 0x442   :  { %v1674_v35 = vcombine.low %v1537_v21, %v1539_v26  ;;  %v1713_v36 = vmax.f32 %v1539_v26, 0.0  ;;  %v1675_v37 = vcombine.low %v1578_v22, %v1580_v27  ;;  %v1715_v38 = vmax.f32 %v1580_v27, 0.0  ;;  %v3066_v26 = vld [vmem:[%s3899_s10 + $0x100] sm:$0xff]  }
 0x443   :  { %v1541_v39 = vpop.f32.mrf.mxu0  ;;  %v1582_v40 = vpop.f32.mrf.mxu1  ;;  %v1720_v44 = vpack.c.bf16 %v1712_v29, %v1712_v29  ;;  %v1722_v49 = vpack.c.bf16 %v1714_v33, %v1714_v33  ;;  %v3067_v32 = vld [vmem:[%s3899_s10 + $0x180] sm:$0xff]  }
 0x444   :  { %v1721_v41 = vpack.c.bf16 %v1713_v36, %v1713_v36  ;;  %v1682_v43 = vrot.slane %v1674_v35, %v3776_v28  ;;  %v1723_v45 = vpack.c.bf16 %v1715_v38, %v1715_v38  ;;  %v1689_v48 = vrot.slane %v1675_v37, %v3776_v28 }
 0x446   :  { %2279 = vmatprep.mubr.bf16.mxu0 %v1721_v41  ;;  %2319 = vmatprep.mubr.bf16.mxu1 %v1723_v45  ;;  %v1690_v51 = vcombine.low %v1682_v43, %v1689_v48 }
 0x447   :  { %2280 = vmatmul.mubr.bf16.vlgmr.msra.gmra.mxu0 %v1720_v44  ;;  %2320 = vmatmul.mubr.bf16.vlgmr.msra.gmra.mxu1 %v1722_v49 }
 0x448   :  { %2815 = vmatpush3.bf16.msra.mxu0 %v3038_v42  ;;  %2837 = vmatpush3.bf16.msra.mxu1 %v3039_v47  ;;  %1710 = vst [vmem:[#allocation3] sm:$0xff] %v1690_v51 }
 0x449   :  { %2816 = vmatprep.subr.bf16.mxu0 %v3040_v46  ;;  %2838 = vmatprep.subr.bf16.mxu1 %v3041_v50 }
 0x44c   :  { %2817 = vmatpush3.bf16.msra.mxu0 %v3042_v52  ;;  %2839 = vmatpush3.bf16.msra.mxu1 %v3043_v53 }
 0x44d   :  { %2818 = vmatprep.subr.bf16.mxu0 %v3044_v54  ;;  %2840 = vmatprep.subr.bf16.mxu1 %v3045_v55 }
 0x450   :  { %2819 = vmatpush3.bf16.msra.mxu0 %v3046_v56  ;;  %2841 = vmatpush3.bf16.msra.mxu1 %v3047_v57 }
 0x451   :  { %2820 = vmatprep.subr.bf16.mxu0 %v3048_v58  ;;  %2842 = vmatprep.subr.bf16.mxu1 %v3049_v59 }
 0x454   :  { %2821 = vmatpush3.bf16.msra.mxu0 %v3050_v60  ;;  %2843 = vmatpush3.bf16.msra.mxu1 %v3051_v61 }
 0x455   :  { %2822 = vmatprep.subr.bf16.mxu0 %v3052_v62  ;;  %2844 = vmatprep.subr.bf16.mxu1 %v3053_v31 }
 0x458   :  { %2823 = vmatpush3.bf16.msra.mxu0 %v3054_v25  ;;  %2845 = vmatpush3.bf16.msra.mxu1 %v3055_v34 }
 0x459   :  { %2824 = vmatprep.subr.bf16.mxu0 %v3056_v18  ;;  %2846 = vmatprep.subr.bf16.mxu1 %v3057_v63 }
 0x45c   :  { %2825 = vmatpush3.bf16.msra.mxu0 %v3058_v3  ;;  %2847 = vmatpush3.bf16.msra.mxu1 %v3059_v6 }
 0x45d   :  { %v1618_v14 = vpop.f32.mrf.mxu0  ;;  %v1659_v15 = vpop.f32.mrf.mxu1  ;;  %2826 = vmatprep.subr.bf16.mxu0 %v3060_v7  ;;  %2848 = vmatprep.subr.bf16.mxu1 %v3061_v11 }
 0x45e   :  { %v1619_v19 = vadd.f32 %v1618_v14, %v1161_v9  ;;  %v1660_v20 = vadd.f32 %v1659_v15, %v1169_v10 }
 0x45f   :  { %v1620_v21 = vpop.f32.mrf.mxu0  ;;  %v1661_v22 = vpop.f32.mrf.mxu1 }
 0x460   :  { %v1621_v23 = vadd.f32 %v1620_v21, %v1165_v5  ;;  %v1662_v24 = vadd.f32 %v1661_v22, %v1173_v12  ;;  %2827 = vmatpush3.bf16.msra.mxu0 %v3062_v13  ;;  %v1716_v27 = vmax.f32 %v1619_v19, 0.0  ;;  %2849 = vmatpush3.bf16.msra.mxu1 %v3063_v16  ;;  %v1718_v33 = vmax.f32 %v1660_v20, 0.0 }
 0x461   :  { %v1622_v29 = vpop.f32.mrf.mxu0  ;;  %v1663_v30 = vpop.f32.mrf.mxu1  ;;  %2828 = vmatprep.subr.bf16.mxu0 %v3064_v17  ;;  %2850 = vmatprep.subr.bf16.mxu1 %v3065_v8 }
 0x462   :  { %v1691_v35 = vcombine.low %v1619_v19, %v1621_v23  ;;  %v1717_v36 = vmax.f32 %v1621_v23, 0.0  ;;  %v1692_v37 = vcombine.low %v1660_v20, %v1662_v24  ;;  %v1719_v38 = vmax.f32 %v1662_v24, 0.0 }
 0x463   :  { %v1623_v39 = vpop.f32.mrf.mxu0  ;;  %v1664_v40 = vpop.f32.mrf.mxu1  ;;  %v1724_v43 = vpack.c.bf16 %v1716_v27, %v1716_v27  ;;  %v1726_v47 = vpack.c.bf16 %v1718_v33, %v1718_v33 }
 0x464   :  { %v1725_v41 = vpack.c.bf16 %v1717_v36, %v1717_v36  ;;  %2829 = vmatpush3.bf16.msra.mxu0 %v3066_v26  ;;  %v1699_v42 = vrot.slane %v1691_v35, %v3776_v28  ;;  %v1727_v44 = vpack.c.bf16 %v1719_v38, %v1719_v38  ;;  %2851 = vmatpush3.bf16.msra.mxu1 %v3067_v32 }
 0x465   :  { %v1706_v45 = vrot.slane %v1692_v37, %v3776_v28  ;;  %v2588_v28 = vld [vmem:[%s3900_s11] ss:$0 sm:$0xff]  ;;  %s3120_s11 = smov [#allocation3]  }
 0x466   :  { %2359 = vmatprep.mubr.bf16.mxu0 %v1725_v41  ;;  %2399 = vmatprep.mubr.bf16.mxu1 %v1727_v44  ;;  %s2426_s16 = sshll.u32 %s3120_s11, 4  ;;  %s2427_s16 = int_to_ptr.vmem [resolvable:$true] %s2426_s16 }
 0x467   :  { %2360 = vmatmul.mubr.bf16.vlgmr.msra.gmra.mxu0 %v1724_v43  ;;  %v1707_v46 = vcombine.low %v1699_v42, %v1706_v45  ;;  %2400 = vmatmul.mubr.bf16.vlgmr.msra.gmra.mxu1 %v1726_v47  ;;  %s3072_s1 = scalar_lea.vmem %s2427_s16, 256  ;;  %p3077_p1 = scmp.lt.s32.totalorder %s2427_s16, %s2427_s16 }
 0x468   :  { %p3073_p0 = scmp.ne.s32.totalorder %s2427_s16, %s3072_s1  ;;  %p3078_p2 = scmp.lt.s32.totalorder %s3072_s1, %s3072_s1 }
 0x469   :  { %1711 = vst [vmem:[#allocation3 + $0x8] sm:$0xff] %v1707_v46 }
 0x46a   :  { %p3079_p3 = por %p3078_p2, %p3077_p1 }
 0x46c   :  { %p3080_p4 = pnand %p3079_p3, %p3073_p0 }
 0x507   :  { %v2786_v48 = vpop.f32.mrf.mxu0  ;;  %v2808_v49 = vpop.f32.mrf.mxu1 }
 0x509   :  { %v2787_v50 = vpop.f32.mrf.mxu0  ;;  %v2809_v51 = vpop.f32.mrf.mxu1 }
 0x50a   :  { %v2788_v56 = vadd.f32 %v2787_v50, %v2786_v48  ;;  %v2810_v59 = vadd.f32 %v2809_v51, %v2808_v49 }
 0x50b   :  { %v2789_v52 = vpop.f32.mrf.mxu0  ;;  %v2811_v53 = vpop.f32.mrf.mxu1 }
 0x50c   :  { %v2282_v57 = vadd.f32 %v2788_v56, %v2588_v28 }
 0x50d   :  { %v2790_v54 = vpop.f32.mrf.mxu0  ;;  %v2812_v55 = vpop.f32.mrf.mxu1 }
 0x50e   :  { %v2322_v62 = vadd.f32 %v2810_v59, %v2282_v57 }
 0x527   :  { %v2830_v58 = vpop.f32.mrf.mxu0  ;;  %v2852_v60 = vpop.f32.mrf.mxu1 }
 0x529   :  { %v2831_v61 = vpop.f32.mrf.mxu0  ;;  %v2853_v25 = vpop.f32.mrf.mxu1 }
 0x52a   :  { %v2832_v31 = vadd.f32 %v2831_v61, %v2830_v58  ;;  %v2854_v63 = vadd.f32 %v2853_v25, %v2852_v60 }
 0x52b   :  { %v2833_v34 = vpop.f32.mrf.mxu0  ;;  %v2855_v0 = vpop.f32.mrf.mxu1 }
 0x52c   :  { %v2362_v18 = vadd.f32 %v2832_v31, %v2322_v62 }
 0x52d   :  { %v2834_v1 = vpop.f32.mrf.mxu0  ;;  %v2856_v3 = vpop.f32.mrf.mxu1 }
 0x52e   :  { %v2402_v2 = vadd.f32 %v2854_v63, %v2362_v18 }
 0x530   :  { %v2408_v4 = vsel %vm2407_vm2, %v2402_v2, -inf }
 0x531   :  { %2409 = vmax.xlane.f32.xlu0 %v2408_v4 }
 0x5ba   :  { %v2410_v6 = vpop.xlane.xlu0 %2409 }
 0x5bb   :  { %v2411_v7 = vsub.f32 %v2402_v2, %v2410_v6 }
 0x5bd   :  { %v2412_v9 = vmul.f32 1.442695, %v2411_v7 }
 0x5bf   :  { %3068 = vpow2.f32 %v2412_v9 }
 0x5cc   :  { %v3069_v10 = vpop.eup %3068 }
 0x5cd   :  { %v2414_v11 = vsel %vm2407_vm2, %v3069_v10, 0.0 }
 0x5ce   :  { %2415 = vadd.xlane.f32.xlu0 %v2414_v11 }
 0x5cf   :  { %3083 = shalt.err (!%p3080_p4)
}
 0x5d0   :  { %2429 = dma.vmem_to_hbm [thread:$0]  %s2427_s16, 256, %s3901_s12, [#allocation4]  }
 0x5d1   :  { %s3121_s6 = smov [#allocation5]  }
 0x5d2   :  { %s2436_s8 = sshll.u32 %s3121_s6, 4  ;;  %s2437_s8 = int_to_ptr.vmem [resolvable:$true] %s2436_s8 }
 0x5d3   :  { %s3092_s19 = scalar_lea.vmem %s2437_s8, 32  ;;  %p3097_p6 = scmp.lt.s32.totalorder %s2437_s8, %s2437_s8 }
 0x5d4   :  { %p3093_p5 = scmp.ne.s32.totalorder %s2437_s8, %s3092_s19  ;;  %p3098_p7 = scmp.lt.s32.totalorder %s3092_s19, %s3092_s19 }
 0x5d6   :  { %p3099_p8 = por %p3098_p7, %p3097_p6 }
 0x5d8   :  { %p3100_p9 = pnand %p3099_p8, %p3093_p5 }
 0x657   :  { %v2416_v5 = vpop.xlane.xlu0 %2415 }
 0x658   :  { %3070 = vrcp.f32 %v2416_v5 }
 0x665   :  { %v3071_v12 = vpop.eup %3070 }
 0x666   :  { %v2418_v13 = vmul.f32 %v3071_v12, %v3069_v10 }
 0x668   :  { %2419 = vst [vmem:[#allocation5] sm:$0x3] %v2418_v13 }
 0x669   :  { %3103 = shalt.err (!%p3100_p9)
}
 0x66a   :  { %2439 = dma.vmem_to_hbm [thread:$0]  %s2437_s8, 32, %s3902_s13, [#allocation6]  }
 0x66b   :  { %3112 = dma.done.wait [#allocation4], 256  }
 0x66c   :  { %3113 = vsyncadd [#allocation4], 4294967040 }
 0x66d   :  { %3114 = dma.done.wait [#allocation6], 32  }
 0x66e   :  { %3115 = vsyncadd [#allocation6], 4294967264 }
 0x66f   :  { %2446 = vsyncpa [#allocation4], 1 }
 0x670   :  { %2447 = vsyncpa [#allocation6], 1 }

</bundles_post_ra>
